<compile_context>
chip_gen: v6e
topology: v6e:2x2x1
jax: 0.10.0
libtpu: 0.0.40
codegen_flags: <defaults>
</compile_context>

<pallas_src>
import functools

import jax
import jax.numpy as jnp
from jax.experimental import pallas as pl
from jax.experimental.pallas import tpu as pltpu

H1 = 1024
H2 = 512
BN_EPS = 1e-5
LANE = 128


def _round_up(v, m):
    return (v + m - 1) // m * m


def _mlp_kernel(x_ref, w1_ref, w2_ref, w3_ref, w4_ref, b_ref, alpha_ref,
                out_ref, *, e_pad, c_pad):
    # Concatenated bias row layout: [b1 (H1) | b2' (H2) | b3' (e_pad) | b4 (c_pad)].
    o1 = H1
    o2 = H1 + H2
    o3 = o2 + e_pad
    b1 = b_ref[:, 0:o1]
    b2 = b_ref[:, o1:o2]
    b3 = b_ref[:, o2:o3]
    b4 = b_ref[:, o3:o3 + c_pad]

    x = x_ref[...]  # already bf16 (pre-cast in wrapper)

    # ---- Linear(D, 1024) + ReLU   (BN1 affine folded into w2/b2) ----
    h1 = jnp.dot(x, w1_ref[...], preferred_element_type=jnp.float32) + b1
    h1 = jnp.maximum(h1, 0.0)

    # ---- Linear(1024, 512) + ReLU (BN2 affine folded into w3/b3) ----
    h2 = jnp.dot(h1.astype(jnp.bfloat16), w2_ref[...],
                 preferred_element_type=jnp.float32) + b2
    h2 = jnp.maximum(h2, 0.0)

    # ---- Linear(512, E_pad) + PReLU (single shared alpha, PyTorch default) ----
    e = jnp.dot(h2.astype(jnp.bfloat16), w3_ref[...],
                preferred_element_type=jnp.float32) + b3
    alpha = alpha_ref[0]  # scalar from SMEM
    e = jnp.where(e >= 0.0, e, alpha * e)

    # ---- classifier: Linear(E_pad, C_pad) ----
    o = jnp.dot(e.astype(jnp.bfloat16), w4_ref[...],
                preferred_element_type=jnp.float32) + b4

    # Fused lane-dense output slab: [embedded (E_pad) | output (C_pad)].
    out_ref[:, 0:e_pad] = e.astype(out_ref.dtype)
    out_ref[:, e_pad:e_pad + c_pad] = o.astype(out_ref.dtype)


def prepare_params(params):
    """One-time weight preparation. Call ONCE, reuse the result across forwards.

    Folds eval-mode BatchNorm affine into the following linear layer, pads the
    embedding / classifier feature dims (and large ragged D) to lane multiples,
    casts weights to bf16 and concatenates all biases into a single f32 row.
    """
    D = params["w1"].shape[0]
    E = params["w3"].shape[1]
    C = params["w4"].shape[1]
    E_pad = _round_up(E, LANE)
    C_pad = _round_up(C, LANE)
    # Only pad the first matmul's K dim when it is large and ragged.
    D_pad = D if D < LANE else _round_up(D, LANE)

    # Fold BN (eval mode) into the following linear layer. Exact:
    #   (relu(z) * s + t) @ W + b == relu(z) @ (s[:, None] * W) + (t @ W + b)
    def fold_into_next(gamma, beta, mean, var, w_next, b_next):
        scale = gamma / jnp.sqrt(var + BN_EPS)
        shift = beta - mean * scale
        return scale[:, None] * w_next, b_next + shift @ w_next

    w2f, b2f = fold_into_next(params["bn1_gamma"], params["bn1_beta"],
                              params["bn1_mean"], params["bn1_var"],
                              params["w2"], params["b2"])
    w3f, b3f = fold_into_next(params["bn2_gamma"], params["bn2_beta"],
                              params["bn2_mean"], params["bn2_var"],
                              params["w3"], params["b3"])

    # Zero-padding is exact: padded w1 rows multiply padded-x zero columns,
    # padded w3/b3 cols are 0 (PReLU(0)=0), padded w4 rows are 0.
    w1p = jnp.pad(params["w1"], ((0, D_pad - D), (0, 0)))
    w3p = jnp.pad(w3f, ((0, 0), (0, E_pad - E)))
    b3p = jnp.pad(b3f, (0, E_pad - E))
    w4p = jnp.pad(params["w4"], ((0, E_pad - E), (0, C_pad - C)))
    b4p = jnp.pad(params["b4"], (0, C_pad - C))

    # Single f32 bias row (added post-accumulation, so kept full precision).
    b_all = jnp.concatenate([params["b1"], b2f, b3p, b4p]).reshape(1, -1)
    b_all = b_all.astype(jnp.float32)

    prepared = dict(
        w1=w1p.astype(jnp.bfloat16),
        w2=w2f.astype(jnp.bfloat16),
        w3=w3p.astype(jnp.bfloat16),
        w4=w4p.astype(jnp.bfloat16),
        b=b_all,
        alpha=jnp.reshape(params["alpha"], (1,)).astype(jnp.float32),
    )
    meta = dict(D=D, D_pad=D_pad, E=E, C=C, E_pad=E_pad, C_pad=C_pad,
                btot=int(b_all.shape[1]))
    return prepared, meta


def _tb_and_grid(B):
    """Batch tile / grid policy (megacore- and step-overhead-aware)."""
    if B < 256:
        TB = _round_up(max(B, 8), 8)        # single block
    elif B < 1024:
        TB = 128                            # >= 2 steps so both v7x TCs work
    else:
        TB = 512                            # amortize per-step overhead (v5e/v6e)
    B_pad = _round_up(B, TB)
    n = B_pad // TB
    # Keep small multi-step grids even so v7x's two TCs get equal work.
    if 2 <= n <= 8 and n % 2 == 1:
        B_pad = _round_up(B, 2 * TB)
        n = B_pad // TB
    return TB, B_pad, n


def _vmem_limit_bytes(TB, d_pad, e_pad, c_pad, btot):
    w_bytes = 2 * (d_pad * H1 + H1 * H2 + H2 * e_pad + e_pad * c_pad)  # bf16, Buffered(1)
    b_bytes = 4 * btot                                                 # f32 bias row
    x_bytes = 2 * (TB * d_pad * 2)                                     # bf16 x, double-buffered
    o_bytes = 2 * (TB * (e_pad + c_pad) * 4)                           # f32 slab, double-buffered
    inter = TB * (H1 + H2 + e_pad + c_pad) * 4                         # f32 intermediates
    est = w_bytes + b_bytes + x_bytes + o_bytes + inter
    try:
        cap = int(pltpu.get_tpu_info().vmem_capacity_bytes)
    except Exception:
        cap = 64 * 1024 * 1024  # conservative floor (v7x per-TC)
    # 2x headroom for compiler scratch, capped below physical VMEM.
    return int(min(max(2 * est, 32 * 1024 * 1024), cap * 5 // 8))


def user_embedding_forward(x, prepared, meta):
    """x: [B, input_dim] float32. Returns (embedded [B, E], output [B, C])."""
    B, D = x.shape
    assert D == meta["D"]
    D_pad = meta["D_pad"]
    E, C = meta["E"], meta["C"]
    E_pad, C_pad = meta["E_pad"], meta["C_pad"]
    btot = meta["btot"]

    TB, B_pad, grid_n = _tb_and_grid(B)

    # Pre-cast x to bf16 (halves x DMA bytes, removes in-kernel cast pass), pad
    # batch and (if needed) feature dims with zeros.
    if B_pad != B or D_pad != D:
        x_in = jnp.pad(x.astype(jnp.bfloat16), ((0, B_pad - B), (0, D_pad - D)))
    else:
        x_in = x.astype(jnp.bfloat16)

    kernel = functools.partial(_mlp_kernel, e_pad=E_pad, c_pad=C_pad)
    const = pl.Buffered(1)  # constant blocks: no double-buffer VMEM waste

    in_specs = [
        pl.BlockSpec((TB, D_pad), lambda i: (i, 0)),                          # x (pipelined)
        pl.BlockSpec((D_pad, H1), lambda i: (0, 0), pipeline_mode=const),     # w1
        pl.BlockSpec((H1, H2), lambda i: (0, 0), pipeline_mode=const),        # w2' (BN1 folded)
        pl.BlockSpec((H2, E_pad), lambda i: (0, 0), pipeline_mode=const),     # w3' (BN2 folded)
        pl.BlockSpec((E_pad, C_pad), lambda i: (0, 0), pipeline_mode=const),  # w4
        pl.BlockSpec((1, btot), lambda i: (0, 0), pipeline_mode=const),       # biases
        pl.BlockSpec(memory_space=pltpu.MemorySpace.SMEM),                    # PReLU alpha
    ]
    out_specs = pl.BlockSpec((TB, E_pad + C_pad), lambda i: (i, 0))

    # With a 1-step grid, "parallel" would make each v7x TC DMA its own copy of
    # the weights for no compute benefit -> use "arbitrary" there.
    semantics = ("parallel",) if grid_n >= 2 else ("arbitrary",)

    slab = pl.pallas_call(
        kernel,
        out_shape=jax.ShapeDtypeStruct((B_pad, E_pad + C_pad), jnp.float32),
        grid_spec=pltpu.PrefetchScalarGridSpec(
            num_scalar_prefetch=0,
            grid=(grid_n,),
            in_specs=in_specs,
            out_specs=out_specs,
        ),
        compiler_params=pltpu.CompilerParams(
            dimension_semantics=semantics,
            vmem_limit_bytes=_vmem_limit_bytes(TB, D_pad, E_pad, C_pad, btot),
        ),
    )(x_in, prepared["w1"], prepared["w2"], prepared["w3"], prepared["w4"],
      prepared["b"], prepared["alpha"])

    embedded = slab[:B, :E]
    output = slab[:B, E_pad:E_pad + C]
    return embedded, output


def init_params(key, input_dim, embedding_dim, num_classes):
    """Deterministic synthetic parameter init (PyTorch-like uniform fan-in bounds)."""
    ks = jax.random.split(key, 16)

    def linear(kw, kb, fan_in, fan_out):
        bound = 1.0 / jnp.sqrt(fan_in)
        w = jax.random.uniform(kw, (fan_in, fan_out), jnp.float32, -bound, bound)
        b = jax.random.uniform(kb, (fan_out,), jnp.float32, -bound, bound)
        return w, b

    w1, b1 = linear(ks[0], ks[1], input_dim, H1)
    w2, b2 = linear(ks[2], ks[3], H1, H2)
    w3, b3 = linear(ks[4], ks[5], H2, embedding_dim)
    w4, b4 = linear(ks[6], ks[7], embedding_dim, num_classes)

    params = dict(
        w1=w1, b1=b1, w2=w2, b2=b2, w3=w3, b3=b3, w4=w4, b4=b4,
        bn1_gamma=1.0 + 0.1 * jax.random.normal(ks[8], (H1,), jnp.float32),
        bn1_beta=0.1 * jax.random.normal(ks[9], (H1,), jnp.float32),
        bn1_mean=0.05 * jax.random.normal(ks[10], (H1,), jnp.float32),
        bn1_var=1.0 + 0.1 * jax.random.uniform(ks[11], (H1,), jnp.float32),
        bn2_gamma=1.0 + 0.1 * jax.random.normal(ks[12], (H2,), jnp.float32),
        bn2_beta=0.1 * jax.random.normal(ks[13], (H2,), jnp.float32),
        bn2_mean=0.05 * jax.random.normal(ks[14], (H2,), jnp.float32),
        bn2_var=1.0 + 0.1 * jax.random.uniform(ks[15], (H2,), jnp.float32),
        alpha=jnp.array(0.25, jnp.float32),  # nn.PReLU() default init
    )
    return params


def reference_forward(x, params):
    """Pure-JAX f32 reference (eval-mode BN semantics) for validation."""
    def bn(v, g, b, m, var):
        return (v - m) / jnp.sqrt(var + BN_EPS) * g + b

    h1 = jnp.maximum(x @ params["w1"] + params["b1"], 0.0)
    h1 = bn(h1, params["bn1_gamma"], params["bn1_beta"],
            params["bn1_mean"], params["bn1_var"])
    h2 = jnp.maximum(h1 @ params["w2"] + params["b2"], 0.0)
    h2 = bn(h2, params["bn2_gamma"], params["bn2_beta"],
            params["bn2_mean"], params["bn2_var"])
    e = h2 @ params["w3"] + params["b3"]
    e = jnp.where(e >= 0.0, e, params["alpha"] * e)
    o = e @ params["w4"] + params["b4"]
    return e, o


if __name__ == "__main__":
    B, input_dim, embedding_dim, num_classes = 8, 64, 32, 10

    key = jax.random.PRNGKey(0)
    kx, kp = jax.random.split(key)
    x = jax.random.normal(kx, (B, input_dim), jnp.float32)
    params = init_params(kp, input_dim, embedding_dim, num_classes)

    # One-time weight preparation (cache and reuse across all forward calls).
    prepared, meta = prepare_params(params)
    prepared = jax.block_until_ready(prepared)

    emb, out = user_embedding_forward(x, prepared, meta)
    emb, out = jax.block_until_ready((emb, out))

    emb_ref, out_ref = reference_forward(x, params)
    assert emb.shape == (B, embedding_dim) and out.shape == (B, num_classes)
    # Looser tolerance: weights are streamed as bf16 (f32 accumulation).
    assert jnp.allclose(emb, emb_ref, atol=3e-2, rtol=3e-2)
    assert jnp.allclose(out, out_ref, atol=3e-2, rtol=3e-2)

    print("KERNEL_OK")
</pallas_src>

<mosaic_0001>
module attributes {stable_mosaic.version = 11 : i64} {
  func.func @_mlp_kernel(%arg0: i32, %arg1: memref<8x64xbf16, #tpu.memory_space<vmem>>, %arg2: memref<64x1024xbf16, #tpu.memory_space<vmem>>, %arg3: memref<1024x512xbf16, #tpu.memory_space<vmem>>, %arg4: memref<512x128xbf16, #tpu.memory_space<vmem>>, %arg5: memref<128x128xbf16, #tpu.memory_space<vmem>>, %arg6: memref<1x1792xf32, #tpu.memory_space<vmem>>, %arg7: memref<1xf32, #tpu.memory_space<smem>>, %arg8: memref<8x256xf32, #tpu.memory_space<vmem>>) attributes {dimension_semantics = [#tpu.dimension_semantics<arbitrary>], iteration_bounds = array<i64: 1>, scalar_prefetch = 0 : i64, scratch_operands = 0 : i64, tpu.core_type = #tpu.core_type<tc>, window_params = [{transform_indices = @transform_0, window_bounds = array<i64: 8, 64>}, {pipeline_mode = #tpu.pipeline_mode<synchronous>, transform_indices = @transform_1, window_bounds = array<i64: 64, 1024>}, {pipeline_mode = #tpu.pipeline_mode<synchronous>, transform_indices = @transform_2, window_bounds = array<i64: 1024, 512>}, {pipeline_mode = #tpu.pipeline_mode<synchronous>, transform_indices = @transform_3, window_bounds = array<i64: 512, 128>}, {pipeline_mode = #tpu.pipeline_mode<synchronous>, transform_indices = @transform_4, window_bounds = array<i64: 128, 128>}, {pipeline_mode = #tpu.pipeline_mode<synchronous>, transform_indices = @transform_5, window_bounds = array<i64: 1, 1792>}, {transform_indices = @transform_6, window_bounds = array<i64: 1>}, {transform_indices = @transform_7, window_bounds = array<i64: 8, 256>}]} {
    %c0 = arith.constant 0 : index
    %c0_0 = arith.constant 0 : index
    %0 = vector.load %arg6[%c0, %c0_0] : memref<1x1792xf32, #tpu.memory_space<vmem>>, vector<1x1024xf32>
    %c0_1 = arith.constant 0 : index
    %c1024 = arith.constant 1024 : index
    %1 = vector.load %arg6[%c0_1, %c1024] : memref<1x1792xf32, #tpu.memory_space<vmem>>, vector<1x512xf32>
    %c0_2 = arith.constant 0 : index
    %c1536 = arith.constant 1536 : index
    %2 = vector.load %arg6[%c0_2, %c1536] : memref<1x1792xf32, #tpu.memory_space<vmem>>, vector<1x128xf32>
    %c0_3 = arith.constant 0 : index
    %c1664 = arith.constant 1664 : index
    %3 = vector.load %arg6[%c0_3, %c1664] : memref<1x1792xf32, #tpu.memory_space<vmem>>, vector<1x128xf32>
    %c0_4 = arith.constant 0 : index
    %c0_5 = arith.constant 0 : index
    %4 = vector.load %arg1[%c0_4, %c0_5] : memref<8x64xbf16, #tpu.memory_space<vmem>>, vector<8x64xbf16>
    %c0_6 = arith.constant 0 : index
    %c0_7 = arith.constant 0 : index
    %5 = vector.load %arg2[%c0_6, %c0_7] : memref<64x1024xbf16, #tpu.memory_space<vmem>>, vector<64x1024xbf16>
    %cst = arith.constant dense<0.000000e+00> : vector<8x1024xf32>
    %6 = tpu.matmul %4, %5, %cst {dimension_numbers = #tpu.dot_dimension_numbers<[1], [0], [0], [1], [0, 0, 1, 1], [], []>} : vector<8x64xbf16>, vector<64x1024xbf16>, vector<8x1024xf32> -> vector<8x1024xf32>
    %7 = vector.broadcast %0 : vector<1x1024xf32> to vector<8x1024xf32>
    %8 = arith.addf %6, %7 : vector<8x1024xf32>
    %cst_8 = arith.constant 0.000000e+00 : f32
    %9 = vector.broadcast %cst_8 : f32 to vector<8x1024xf32>
    %10 = arith.maximumf %8, %9 : vector<8x1024xf32>
    %11 = arith.truncf %10 : vector<8x1024xf32> to vector<8x1024xbf16>
    %c0_9 = arith.constant 0 : index
    %c0_10 = arith.constant 0 : index
    %12 = vector.load %arg3[%c0_9, %c0_10] : memref<1024x512xbf16, #tpu.memory_space<vmem>>, vector<1024x512xbf16>
    %cst_11 = arith.constant dense<0.000000e+00> : vector<8x512xf32>
    %13 = tpu.matmul %11, %12, %cst_11 {dimension_numbers = #tpu.dot_dimension_numbers<[1], [0], [0], [1], [0, 0, 1, 1], [], []>} : vector<8x1024xbf16>, vector<1024x512xbf16>, vector<8x512xf32> -> vector<8x512xf32>
    %14 = vector.broadcast %1 : vector<1x512xf32> to vector<8x512xf32>
    %15 = arith.addf %13, %14 : vector<8x512xf32>
    %cst_12 = arith.constant 0.000000e+00 : f32
    %16 = vector.broadcast %cst_12 : f32 to vector<8x512xf32>
    %17 = arith.maximumf %15, %16 : vector<8x512xf32>
    %18 = arith.truncf %17 : vector<8x512xf32> to vector<8x512xbf16>
    %c0_13 = arith.constant 0 : index
    %c0_14 = arith.constant 0 : index
    %19 = vector.load %arg4[%c0_13, %c0_14] : memref<512x128xbf16, #tpu.memory_space<vmem>>, vector<512x128xbf16>
    %cst_15 = arith.constant dense<0.000000e+00> : vector<8x128xf32>
    %20 = tpu.matmul %18, %19, %cst_15 {dimension_numbers = #tpu.dot_dimension_numbers<[1], [0], [0], [1], [0, 0, 1, 1], [], []>} : vector<8x512xbf16>, vector<512x128xbf16>, vector<8x128xf32> -> vector<8x128xf32>
    %21 = vector.broadcast %2 : vector<1x128xf32> to vector<8x128xf32>
    %22 = arith.addf %20, %21 : vector<8x128xf32>
    %c0_16 = arith.constant 0 : index
    %23 = memref.load %arg7[%c0_16] : memref<1xf32, #tpu.memory_space<smem>>
    %cst_17 = arith.constant 0.000000e+00 : f32
    %24 = vector.broadcast %cst_17 : f32 to vector<8x128xf32>
    %25 = arith.cmpf oge, %22, %24 : vector<8x128xf32>
    %26 = vector.broadcast %23 : f32 to vector<8x128xf32>
    %27 = arith.mulf %26, %22 : vector<8x128xf32>
    %28 = arith.select %25, %22, %27 : vector<8x128xi1>, vector<8x128xf32>
    %29 = arith.truncf %28 : vector<8x128xf32> to vector<8x128xbf16>
    %c0_18 = arith.constant 0 : index
    %c0_19 = arith.constant 0 : index
    %30 = vector.load %arg5[%c0_18, %c0_19] : memref<128x128xbf16, #tpu.memory_space<vmem>>, vector<128x128xbf16>
    %cst_20 = arith.constant dense<0.000000e+00> : vector<8x128xf32>
    %31 = tpu.matmul %29, %30, %cst_20 {dimension_numbers = #tpu.dot_dimension_numbers<[1], [0], [0], [1], [0, 0, 1, 1], [], []>} : vector<8x128xbf16>, vector<128x128xbf16>, vector<8x128xf32> -> vector<8x128xf32>
    %32 = vector.broadcast %3 : vector<1x128xf32> to vector<8x128xf32>
    %33 = arith.addf %31, %32 : vector<8x128xf32>
    %c0_21 = arith.constant 0 : index
    %c0_22 = arith.constant 0 : index
    %34 = vector.load %arg8[%c0_21, %c0_22] : memref<8x256xf32, #tpu.memory_space<vmem>>, vector<8x128xf32>
    tpu.vector_store %arg8[%c0_21, %c0_22], %28 {strides = array<i32>} : memref<8x256xf32, #tpu.memory_space<vmem>>, vector<8x128xf32>,
    %c0_23 = arith.constant 0 : index
    %c128 = arith.constant 128 : index
    %35 = vector.load %arg8[%c0_23, %c128] : memref<8x256xf32, #tpu.memory_space<vmem>>, vector<8x128xf32>
    tpu.vector_store %arg8[%c0_23, %c128], %33 {strides = array<i32>} : memref<8x256xf32, #tpu.memory_space<vmem>>, vector<8x128xf32>,
    return
  }
  func.func @transform_0(%arg0: i32) -> (i32, i32) {
    %c0_i32 = arith.constant 0 : i32
    %c0_i32_0 = arith.constant 0 : i32
    return %arg0, %c0_i32 : i32, i32
  }
  func.func @transform_1(%arg0: i32) -> (i32, i32) {
    %c0_i32 = arith.constant 0 : i32
    %c0_i32_0 = arith.constant 0 : i32
    %c0_i32_1 = arith.constant 0 : i32
    return %c0_i32, %c0_i32_0 : i32, i32
  }
  func.func @transform_2(%arg0: i32) -> (i32, i32) {
    %c0_i32 = arith.constant 0 : i32
    %c0_i32_0 = arith.constant 0 : i32
    %c0_i32_1 = arith.constant 0 : i32
    return %c0_i32, %c0_i32_0 : i32, i32
  }
  func.func @transform_3(%arg0: i32) -> (i32, i32) {
    %c0_i32 = arith.constant 0 : i32
    %c0_i32_0 = arith.constant 0 : i32
    %c0_i32_1 = arith.constant 0 : i32
    return %c0_i32, %c0_i32_0 : i32, i32
  }
  func.func @transform_4(%arg0: i32) -> (i32, i32) {
    %c0_i32 = arith.constant 0 : i32
    %c0_i32_0 = arith.constant 0 : i32
    %c0_i32_1 = arith.constant 0 : i32
    return %c0_i32, %c0_i32_0 : i32, i32
  }
  func.func @transform_5(%arg0: i32) -> (i32, i32) {
    %c0_i32 = arith.constant 0 : i32
    %c0_i32_0 = arith.constant 0 : i32
    %c0_i32_1 = arith.constant 0 : i32
    return %c0_i32, %c0_i32_0 : i32, i32
  }
  func.func @transform_6(%arg0: i32) -> i32 {
    %c0_i32 = arith.constant 0 : i32
    %c0_i32_0 = arith.constant 0 : i32
    return %c0_i32 : i32
  }
  func.func @transform_7(%arg0: i32) -> (i32, i32) {
    %c0_i32 = arith.constant 0 : i32
    %c0_i32_0 = arith.constant 0 : i32
    return %arg0, %c0_i32 : i32, i32
  }
}

</mosaic_0001>

<bundles_post_ra>
// kernel: tpu_custom_call.1
= control target key start
LH: loop header
LB: loop body
LE: loop exit
PB: predicated region body
PF: predicated region fallthrough
CT: control target
= control target key end

     0   :  { %13 = vsyncpa [#allocation4], 0  ;;  %s4083_s0 = inlined_call_operand.hbm [shape: bf16[8,64], index: 0, kind: input, shape index: {}]   ;;  %s4084_s1 = inlined_call_operand.hbm [shape: bf16[64,1024], index: 1, kind: input, shape index: {}]   ;;  %s4085_s2 = inlined_call_operand.hbm [shape: bf16[1024,512], index: 2, kind: input, shape index: {}]   ;;  %s4086_s3 = inlined_call_operand.hbm [shape: bf16[512,128], index: 3, kind: input, shape index: {}]   ;;  %s4087_s4 = inlined_call_operand.hbm [shape: bf16[128,128], index: 4, kind: input, shape index: {}]   ;;  %s4088_s5 = inlined_call_operand.hbm [shape: f32[1,1792], index: 5, kind: input, shape index: {}]   ;;  %s4089_s6 = inlined_call_operand.<no memory space> [shape: f32[1], index: 6, kind: input, shape index: {}]   ;;  %s4090_s7 = inlined_call_operand.hbm [shape: f32[8,256], index: 7, kind: output, shape index: {}]  }
   0x1   :  { %14 = vsyncpa [#allocation7], 0 }
   0x2   :  { %15 = vsyncpa [#allocation10], 0 }
   0x3   :  { %16 = vsyncpa [#allocation13], 0 }
   0x4   :  { %17 = vsyncpa [#allocation5], 0  ;;  %s3897_s24 = smov [#allocation6]  }
   0x5   :  { %s33_s25 = sshll.u32 %s3897_s24, 4  ;;  %s34_s25 = int_to_ptr.vmem [resolvable:$true] %s33_s25 }
   0x6   :  { %s3755_s26 = scalar_lea.vmem %s34_s25, 4096  ;;  %p3760_p1 = scmp.lt.s32.totalorder %s34_s25, %s34_s25 }
   0x7   :  { %p3756_p0 = scmp.ne.s32.totalorder %s34_s25, %s3755_s26  ;;  %p3761_p2 = scmp.lt.s32.totalorder %s3755_s26, %s3755_s26 }
   0x9   :  { %p3762_p3 = por %p3761_p2, %p3760_p1 }
   0xb   :  { %p3763_p4 = pnand %p3762_p3, %p3756_p0 }
   0xd   :  { %3766 = shalt.err (!%p3763_p4)
}
   0xe   :  { %s3898_s27 = smov 512   ;;  %s3899_s28 = smov 32  }
   0xf   :  { %39 = dma.hbm_to_vmem [thread:$0]  %s4084_s1, 4096, %s34_s25, [#allocation7], %s3898_s27, %s3898_s27, %s3899_s28  }
  0x10   :  { %s3900_s8 = smov [#allocation9]  }
  0x11   :  { %s57_s9 = sshll.u32 %s3900_s8, 4  ;;  %s58_s9 = int_to_ptr.vmem [resolvable:$true] %s57_s9 }
  0x12   :  { %s3775_s10 = scalar_lea.vmem %s58_s9, 4096  ;;  %p3780_p6 = scmp.lt.s32.totalorder %s58_s9, %s58_s9 }
  0x13   :  { %p3776_p5 = scmp.ne.s32.totalorder %s58_s9, %s3775_s10  ;;  %p3781_p7 = scmp.lt.s32.totalorder %s3775_s10, %s3775_s10 }
  0x15   :  { %p3782_p8 = por %p3781_p7, %p3780_p6 }
  0x17   :  { %p3783_p9 = pnand %p3782_p8, %p3776_p5 }
  0x19   :  { %3786 = shalt.err (!%p3783_p9)
}
  0x1a   :  { %s3901_s11 = smov 64   ;;  %s3902_s12 = smov 4  }
  0x1b   :  { %63 = dma.hbm_to_vmem [thread:$0]  %s4086_s3, 4096, %s58_s9, [#allocation10], %s3901_s11, %s3901_s11, %s3902_s12  }
  0x1c   :  { %s3903_s1 = smov [#allocation3]   ;;  %s3904_s16 = smov [#allocation8]  }
  0x1d   :  { %s24_s15 = sshll.u32 %s3903_s1, 4  ;;  %s45_s17 = sshll.u32 %s3904_s16, 4  ;;  %s25_s15 = int_to_ptr.vmem [resolvable:$true] %s24_s15  ;;  %s46_s17 = int_to_ptr.vmem [resolvable:$true] %s45_s17 }
  0x1e   :  { %s3795_s18 = scalar_lea.vmem %s25_s15, 64  ;;  %p3800_p11 = scmp.lt.s32.totalorder %s25_s15, %s25_s15 }
  0x1f   :  { %p3796_p10 = scmp.ne.s32.totalorder %s25_s15, %s3795_s18  ;;  %p3801_p12 = scmp.lt.s32.totalorder %s3795_s18, %s3795_s18 }
  0x21   :  { %p3802_p13 = por %p3801_p12, %p3800_p11 }
  0x23   :  { %p3803_p0 = pnand %p3802_p13, %p3796_p10 }
  0x25   :  { %3806 = shalt.err (!%p3803_p0)
}
  0x26   :  { %27 = dma.hbm_to_vmem [thread:$0]  %s4083_s0, 64, %s25_s15, [#allocation4]  }
  0x27   :  { %s3815_s21 = scalar_lea.vmem %s46_s17, 32768  ;;  %p3820_p2 = scmp.lt.s32.totalorder %s46_s17, %s46_s17 }
  0x28   :  { %p3816_p1 = scmp.ne.s32.totalorder %s46_s17, %s3815_s21  ;;  %p3821_p3 = scmp.lt.s32.totalorder %s3815_s21, %s3815_s21 }
  0x2a   :  { %p3822_p4 = por %p3821_p3, %p3820_p2 }
  0x2c   :  { %p3823_p5 = pnand %p3822_p4, %p3816_p1 }
  0x2e   :  { %3826 = shalt.err (!%p3823_p5)
}
  0x2f   :  { %s3905_s3 = smov 256   ;;  %s3906_s22 = smov 16  }
  0x30   :  { %51 = dma.hbm_to_vmem [thread:$0]  %s4085_s2, 32768, %s46_s17, [#allocation7], %s3905_s3, %s3905_s3, %s3906_s22  }
  0x31   :  { %s3907_s25 = smov [#allocation11]   ;;  %s3908_s27 = smov [#allocation12]  }
  0x32   :  { %s69_s26 = sshll.u32 %s3907_s25, 4  ;;  %s82_s28 = sshll.u32 %s3908_s27, 4  ;;  %s70_s26 = int_to_ptr.vmem [resolvable:$true] %s69_s26  ;;  %s83_s28 = int_to_ptr.vmem [resolvable:$true] %s82_s28 }
  0x33   :  { %s3835_s0 = scalar_lea.vmem %s70_s26, 1024  ;;  %p3840_p7 = scmp.lt.s32.totalorder %s70_s26, %s70_s26 }
  0x34   :  { %p3836_p6 = scmp.ne.s32.totalorder %s70_s26, %s3835_s0  ;;  %p3841_p8 = scmp.lt.s32.totalorder %s3835_s0, %s3835_s0 }
  0x36   :  { %p3842_p9 = por %p3841_p8, %p3840_p7 }
  0x38   :  { %p3843_p10 = pnand %p3842_p9, %p3836_p6 }
  0x3a   :  { %3846 = shalt.err (!%p3843_p10)
}
  0x3b   :  { %75 = dma.hbm_to_vmem [thread:$0]  %s4087_s4, 1024, %s70_s26, [#allocation10], %s3901_s11, %s3901_s11, %s3902_s12  }
  0x3c   :  { %s3855_s2 = scalar_lea.vmem %s83_s28, 224  ;;  %p3860_p12 = scmp.lt.s32.totalorder %s83_s28, %s83_s28 }
  0x3d   :  { %p3856_p11 = scmp.ne.s32.totalorder %s83_s28, %s3855_s2  ;;  %p3861_p13 = scmp.lt.s32.totalorder %s3855_s2, %s3855_s2 }
  0x3f   :  { %p3862_p0 = por %p3861_p13, %p3860_p12 }
  0x41   :  { %p3863_p1 = pnand %p3862_p0, %p3856_p11 }
  0x43   :  { %3866 = shalt.err (!%p3863_p1)
}
  0x44   :  { %85 = dma.hbm_to_vmem [thread:$0]  %s4088_s5, 224, %s83_s28, [#allocation13]  }
  0x45   :  { %3887 = dma.done.wait [#allocation4], 64  }
  0x46   :  { %3888 = vsyncadd [#allocation4], 4294967232 }
  0x47   :  { %3889 = dma.done.wait [#allocation7], 36864  }
  0x48   :  { %3890 = vsyncadd [#allocation7], 4294930432 }
  0x49   :  { %3891 = dma.done.wait [#allocation10], 5120  }
  0x4a   :  { %3892 = vsyncadd [#allocation10], 4294962176 }
  0x4b   :  { %3893 = dma.done.wait [#allocation13], 224  }
  0x4c   :  { %3894 = vsyncadd [#allocation13], 4294967072  ;;  %v3909_v0 = vmov 0   ;;  %v136_v1 = vld [vmem:[#allocation6 + $0xc0] sm:$0xff]  ;;  %v138_v14 = vld [vmem:[#allocation6 + $0xd0] sm:$0xff]  ;;  %vm345_vm0 = vcmask 523264  }
  0x4d   :  { %381 = vmatprep.mubr.bf16.mxu1 %v3909_v0  ;;  %463 = vmatprep.mubr.bf16.mxu0 %v3909_v0  ;;  %v140_v2 = vld [vmem:[#allocation6 + $0xe0] sm:$0xff]  ;;  %v142_v15 = vld [vmem:[#allocation6 + $0xf0] sm:$0xff]  ;;  %v137_v25 = vld [vmem:[#allocation6 + $0xc8] sm:$0xff]  ;;  %vm3911_vm1 = vmmov 0   ;;  %s3912_s10 = smov [#allocation14]  }
  0x4e   :  { %v128_v3 = vld [vmem:[#allocation6 + $0x80] sm:$0xff]  ;;  %v2925_v4 = vcombine.high %v136_v1, %v140_v2  ;;  %v2924_v5 = vcombine.low %v136_v1, %v140_v2  ;;  %v130_v16 = vld [vmem:[#allocation6 + $0x90] sm:$0xff]  ;;  %v2929_v18 = vcombine.high %v138_v14, %v142_v15  ;;  %v2928_v19 = vcombine.low %v138_v14, %v142_v15  ;;  %v141_v26 = vld [vmem:[#allocation6 + $0xe8] sm:$0xff]  ;;  %s2888_s11 = sshll.u32 %s3912_s10, 4  ;;  %s2889_s11 = int_to_ptr.vmem [resolvable:$true] %s2888_s11 }
  0x4f   :  { %v132_v6 = vld [vmem:[#allocation6 + $0xa0] sm:$0xff]  ;;  %v134_v17 = vld [vmem:[#allocation6 + $0xb0] sm:$0xff]  ;;  %v2927_v32 = vcombine.high %v137_v25, %v141_v26  ;;  %v129_v33 = vld [vmem:[#allocation6 + $0x88] sm:$0xff]  ;;  %v2926_v38 = vcombine.low %v137_v25, %v141_v26  ;;  %s3867_s12 = scalar_lea.vmem %s2889_s11, 256  ;;  %p3872_p3 = scmp.lt.s32.totalorder %s2889_s11, %s2889_s11 }
  0x50   :  { %v2917_v7 = vcombine.high %v128_v3, %v132_v6  ;;  %v120_v8 = vld [vmem:[#allocation6 + $0x40] sm:$0xff]  ;;  %357 = vmatprep.subr.bf16.mxu1 %v2925_v4  ;;  %v2916_v10 = vcombine.low %v128_v3, %v132_v6  ;;  %v2921_v20 = vcombine.high %v130_v16, %v134_v17  ;;  %v122_v22 = vld [vmem:[#allocation6 + $0x50] sm:$0xff]  ;;  %439 = vmatprep.subr.bf16.mxu0 %v2929_v18  ;;  %v133_v34 = vld [vmem:[#allocation6 + $0xa8] sm:$0xff]  ;;  %p3868_p2 = scmp.ne.s32.totalorder %s2889_s11, %s3867_s12  ;;  %p3873_p4 = scmp.lt.s32.totalorder %s3867_s12, %s3867_s12 }
  0x51   :  { %v124_v9 = vld [vmem:[#allocation6 + $0x60] sm:$0xff]  ;;  %358 = vmatpush1.bf16.msra.mxu1 %v2924_v5  ;;  %v126_v23 = vld [vmem:[#allocation6 + $0x70] sm:$0xff]  ;;  %440 = vmatpush1.bf16.msra.mxu0 %v2928_v19  ;;  %v2920_v27 = vcombine.low %v130_v16, %v134_v17  ;;  %v3979_v37 = vld [vmem:[#allocation3] sm:$0xf]  ;;  %v2919_v39 = vcombine.high %v129_v33, %v133_v34  ;;  %v2918_v44 = vcombine.low %v129_v33, %v133_v34 }
  0x52   :  { %359 = vmatprep.subr.bf16.mxu1 %v2917_v7  ;;  %v2909_v11 = vcombine.high %v120_v8, %v124_v9  ;;  %v112_v12 = vld [vmem:[#allocation6] sm:$0xff]  ;;  %v2908_v21 = vcombine.low %v120_v8, %v124_v9  ;;  %441 = vmatprep.subr.bf16.mxu0 %v2921_v20  ;;  %v2913_v28 = vcombine.high %v122_v22, %v126_v23  ;;  %v114_v29 = vld [vmem:[#allocation6 + $0x10] sm:$0xff]  ;;  %v121_v40 = vld [vmem:[#allocation6 + $0x48] sm:$0xff]  ;;  %p3874_p5 = por %p3873_p4, %p3872_p3 }
  0x53   :  { %v116_v13 = vld [vmem:[#allocation6 + $0x20] sm:$0xff]  ;;  %v118_v31 = vld [vmem:[#allocation6 + $0x30] sm:$0xff]  ;;  %v2912_v35 = vcombine.low %v122_v22, %v126_v23  ;;  %v125_v41 = vld [vmem:[#allocation6 + $0x68] sm:$0xff] }
  0x54   :  { %v2901_v24 = vcombine.high %v112_v12, %v116_v13  ;;  %v2900_v30 = vcombine.low %v112_v12, %v116_v13  ;;  %v2905_v36 = vcombine.high %v114_v29, %v118_v31  ;;  %v2904_v42 = vcombine.low %v114_v29, %v118_v31  ;;  %v3325_v43 = vld [vmem:[#allocation8 + $0xe4] ss:$16 sps:$4 sm:$0xff]   ;;  %v113_v46 = vld [vmem:[#allocation6 + $0x8] sm:$0xff]  ;;  %v3323_v48 = vld [vmem:[#allocation8 + $0xe0] ss:$16 sps:$4 sm:$0xff]   ;;  %p3875_p6 = pnand %p3874_p5, %p3868_p2 }
  0x55   :  { %360 = vmatpush1.bf16.msra.mxu1 %v2916_v10  ;;  %442 = vmatpush1.bf16.msra.mxu0 %v2920_v27  ;;  %v2911_v45 = vcombine.high %v121_v40, %v125_v41  ;;  %v117_v47 = vld [vmem:[#allocation6 + $0x28] sm:$0xff]  ;;  %v3328_v49 = vld [vmem:[#allocation8 + $0xc4] ss:$16 sps:$4 sm:$0xff]   ;;  %v2910_v50 = vcombine.low %v121_v40, %v125_v41  ;;  %v139_v52 = vld [vmem:[#allocation6 + $0xd8] sm:$0xff] }
  0x56   :  { %361 = vmatprep.subr.bf16.mxu1 %v2909_v11  ;;  %443 = vmatprep.subr.bf16.mxu0 %v2913_v28  ;;  %v2903_v51 = vcombine.high %v113_v46, %v117_v47  ;;  %v143_v53 = vld [vmem:[#allocation6 + $0xf8] sm:$0xff]  ;;  %v3326_v54 = vld [vmem:[#allocation8 + $0xc0] ss:$16 sps:$4 sm:$0xff]   ;;  %v3331_v55 = vld [vmem:[#allocation8 + $0xa4] ss:$16 sps:$4 sm:$0xff]   ;;  %v2902_v56 = vcombine.low %v113_v46, %v117_v47 }
  0x57   :  { %v2931_v57 = vcombine.high %v139_v52, %v143_v53  ;;  %v131_v58 = vld [vmem:[#allocation6 + $0x98] sm:$0xff]  ;;  %v3329_v60 = vld [vmem:[#allocation8 + $0xa0] ss:$16 sps:$4 sm:$0xff]   ;;  %v3334_v61 = vld [vmem:[#allocation8 + $0x84] ss:$16 sps:$4 sm:$0xff]   ;;  %v2930_v62 = vcombine.low %v139_v52, %v143_v53 }
  0x58   :  { %v135_v59 = vld [vmem:[#allocation6 + $0xb8] sm:$0xff]  ;;  %v3332_v3 = vld [vmem:[#allocation8 + $0x80] ss:$16 sps:$4 sm:$0xff]   ;;  %v3337_v4 = vld [vmem:[#allocation8 + $0x64] ss:$16 sps:$4 sm:$0xff]  }
  0x59   :  { %362 = vmatpush1.bf16.msra.mxu1 %v2908_v21  ;;  %444 = vmatpush1.bf16.msra.mxu0 %v2912_v35  ;;  %v2923_v63 = vcombine.high %v131_v58, %v135_v59  ;;  %v123_v1 = vld [vmem:[#allocation6 + $0x58] sm:$0xff]  ;;  %v2922_v5 = vcombine.low %v131_v58, %v135_v59  ;;  %v3335_v9 = vld [vmem:[#allocation8 + $0x60] ss:$16 sps:$4 sm:$0xff]   ;;  %v3343_v10 = vld [vmem:[#allocation8 + $0x44] ss:$16 sps:$4 sm:$0xff]  }
  0x5a   :  { %363 = vmatprep.subr.bf16.mxu1 %v2901_v24  ;;  %445 = vmatprep.subr.bf16.mxu0 %v2905_v36  ;;  %v127_v2 = vld [vmem:[#allocation6 + $0x78] sm:$0xff]  ;;  %v3341_v13 = vld [vmem:[#allocation8 + $0x40] ss:$16 sps:$4 sm:$0xff]   ;;  %v3340_v14 = vld [vmem:[#allocation8 + $0x2e4] ss:$16 sps:$4 sm:$0xff]  }
  0x5b   :  { %v2915_v6 = vcombine.high %v123_v1, %v127_v2  ;;  %v115_v7 = vld [vmem:[#allocation6 + $0x18] sm:$0xff]  ;;  %v2914_v11 = vcombine.low %v123_v1, %v127_v2  ;;  %v3349_v15 = vld [vmem:[#allocation8 + $0x24] ss:$16 sps:$4 sm:$0xff]   ;;  %v3338_v18 = vld [vmem:[#allocation8 + $0x2e0] ss:$16 sps:$4 sm:$0xff]  }
  0x5c   :  { %v119_v8 = vld [vmem:[#allocation6 + $0x38] sm:$0xff]  ;;  %v3355_v17 = vld [vmem:[#allocation8 + $0x4] ss:$16 sps:$4 sm:$0xff]   ;;  %v3353_v20 = vld [vmem:[#allocation8] ss:$16 sps:$4 sm:$0xff]  }
  0x5d   :  { %364 = vmatpush1.bf16.msra.mxu1 %v2900_v30  ;;  %446 = vmatpush1.bf16.msra.mxu0 %v2904_v42  ;;  %v2907_v12 = vcombine.high %v115_v7, %v119_v8  ;;  %v2906_v16 = vcombine.low %v115_v7, %v119_v8  ;;  %v3346_v19 = vld [vmem:[#allocation8 + $0x2c4] ss:$16 sps:$4 sm:$0xff]   ;;  %v3344_v22 = vld [vmem:[#allocation8 + $0x2c0] ss:$16 sps:$4 sm:$0xff]  }
  0x5e   :  { %398 = vmatprep.subr.bf16.mxu1 %v2927_v32  ;;  %2086 = vmatprep.subr.bf16.mxu0 %v3325_v43  ;;  %v3361_v21 = vld [vmem:[#allocation8 + $0x1e4] ss:$16 sps:$4 sm:$0xff]   ;;  %v3359_v24 = vld [vmem:[#allocation8 + $0x1e0] ss:$16 sps:$4 sm:$0xff]  }
  0x5f   :  { %v3352_v23 = vld [vmem:[#allocation8 + $0x2a4] ss:$16 sps:$4 sm:$0xff]   ;;  %v3350_v26 = vld [vmem:[#allocation8 + $0x2a0] ss:$16 sps:$4 sm:$0xff]  }
  0x60   :  { %2932 = vmatmul.mubr.msk.bf16.vlgmr.msra.gmra.mxu1 %vm345_vm0, %v3979_v37  ;;  %2934 = vmatmul.mubr.msk.bf16.vlgmr.msra.gmra.mxu0 %vm345_vm0, %v3979_v37  ;;  %v3367_v25 = vld [vmem:[#allocation8 + $0x1c4] ss:$16 sps:$4 sm:$0xff]   ;;  %v3365_v28 = vld [vmem:[#allocation8 + $0x1c0] ss:$16 sps:$4 sm:$0xff]  }
  0x61   :  { %399 = vmatpush1.bf16.msra.mxu1 %v2926_v38  ;;  %422 = vmatprep.mubr.bf16.mxu1 %v3909_v0  ;;  %v3358_v27 = vld [vmem:[#allocation8 + $0x284] ss:$16 sps:$4 sm:$0xff]   ;;  %v3356_v30 = vld [vmem:[#allocation8 + $0x280] ss:$16 sps:$4 sm:$0xff]  }
  0x62   :  { %400 = vmatprep.subr.bf16.mxu1 %v2919_v39  ;;  %2087 = vmatpush1.bf16.msra.mxu0 %v3323_v48  ;;  %v3373_v29 = vld [vmem:[#allocation8 + $0x1a4] ss:$16 sps:$4 sm:$0xff]   ;;  %v3371_v32 = vld [vmem:[#allocation8 + $0x1a0] ss:$16 sps:$4 sm:$0xff]  }
  0x63   :  { %2088 = vmatprep.subr.bf16.mxu0 %v3328_v49  ;;  %v3364_v31 = vld [vmem:[#allocation8 + $0x264] ss:$16 sps:$4 sm:$0xff]   ;;  %v3362_v34 = vld [vmem:[#allocation8 + $0x260] ss:$16 sps:$4 sm:$0xff]  }
  0x64   :  { %v3379_v33 = vld [vmem:[#allocation8 + $0x184] ss:$16 sps:$4 sm:$0xff]   ;;  %v3377_v36 = vld [vmem:[#allocation8 + $0x180] ss:$16 sps:$4 sm:$0xff]  }
  0x65   :  { %401 = vmatpush1.bf16.msra.mxu1 %v2918_v44  ;;  %v3370_v35 = vld [vmem:[#allocation8 + $0x244] ss:$16 sps:$4 sm:$0xff]   ;;  %v3368_v38 = vld [vmem:[#allocation8 + $0x240] ss:$16 sps:$4 sm:$0xff]  }
  0x66   :  { %402 = vmatprep.subr.bf16.mxu1 %v2911_v45  ;;  %2089 = vmatpush1.bf16.msra.mxu0 %v3326_v54  ;;  %v3376_v39 = vld [vmem:[#allocation8 + $0x224] ss:$16 sps:$4 sm:$0xff]   ;;  %v3383_v40 = vld [vmem:[#allocation8 + $0x160] ss:$16 sps:$4 sm:$0xff]  }
  0x67   :  { %2090 = vmatprep.subr.bf16.mxu0 %v3331_v55  ;;  %v3391_v41 = vld [vmem:[#allocation8 + $0x144] ss:$16 sps:$4 sm:$0xff]   ;;  %v3374_v42 = vld [vmem:[#allocation8 + $0x220] ss:$16 sps:$4 sm:$0xff]  }
  0x68   :  { %v3382_v43 = vld [vmem:[#allocation8 + $0x204] ss:$16 sps:$4 sm:$0xff]   ;;  %v3389_v44 = vld [vmem:[#allocation8 + $0x140] ss:$16 sps:$4 sm:$0xff]  }
  0x69   :  { %403 = vmatpush1.bf16.msra.mxu1 %v2910_v50  ;;  %v3380_v45 = vld [vmem:[#allocation8 + $0x200] ss:$16 sps:$4 sm:$0xff]   ;;  %v3388_v46 = vld [vmem:[#allocation8 + $0x3e4] ss:$16 sps:$4 sm:$0xff]  }
  0x6a   :  { %404 = vmatprep.subr.bf16.mxu1 %v2903_v51  ;;  %2091 = vmatpush1.bf16.msra.mxu0 %v3329_v60  ;;  %v3386_v47 = vld [vmem:[#allocation8 + $0x3e0] ss:$16 sps:$4 sm:$0xff]   ;;  %v3394_v48 = vld [vmem:[#allocation8 + $0x3c4] ss:$16 sps:$4 sm:$0xff]  }
  0x6b   :  { %2092 = vmatprep.subr.bf16.mxu0 %v3334_v61  ;;  %v3392_v49 = vld [vmem:[#allocation8 + $0x3c0] ss:$16 sps:$4 sm:$0xff]   ;;  %v3397_v50 = vld [vmem:[#allocation8 + $0x124] ss:$16 sps:$4 sm:$0xff]  }
  0x6c   :  { %v3395_v51 = vld [vmem:[#allocation8 + $0x120] ss:$16 sps:$4 sm:$0xff]   ;;  %v3400_v52 = vld [vmem:[#allocation8 + $0x3a4] ss:$16 sps:$4 sm:$0xff]  }
  0x6d   :  { %405 = vmatpush1.bf16.msra.mxu1 %v2902_v56  ;;  %v3398_v53 = vld [vmem:[#allocation8 + $0x3a0] ss:$16 sps:$4 sm:$0xff]   ;;  %v3403_v54 = vld [vmem:[#allocation8 + $0x104] ss:$16 sps:$4 sm:$0xff]  }
  0x6e   :  { %480 = vmatprep.subr.bf16.mxu1 %v2931_v57  ;;  %2093 = vmatpush1.bf16.msra.mxu0 %v3332_v3  ;;  %v3401_v55 = vld [vmem:[#allocation8 + $0x100] ss:$16 sps:$4 sm:$0xff]   ;;  %v3406_v56 = vld [vmem:[#allocation8 + $0x384] ss:$16 sps:$4 sm:$0xff]  }
  0x6f   :  { %2094 = vmatprep.subr.bf16.mxu0 %v3337_v4  ;;  %v3412_v57 = vld [vmem:[#allocation8 + $0x4e4] ss:$16 sps:$4 sm:$0xff]   ;;  %v3404_v58 = vld [vmem:[#allocation8 + $0x380] ss:$16 sps:$4 sm:$0xff]  }
  0x70   :  { %2933 = vmatmul.mubr.msk.bf16.vlgmr.msra.gmra.mxu1 %vm345_vm0, %v3979_v37  ;;  %v3409_v59 = vld [vmem:[#allocation8 + $0x364] ss:$16 sps:$4 sm:$0xff]   ;;  %v3407_v60 = vld [vmem:[#allocation8 + $0x360] ss:$16 sps:$4 sm:$0xff]  }
  0x71   :  { %481 = vmatpush1.bf16.msra.mxu1 %v2930_v62  ;;  %504 = vmatprep.mubr.bf16.mxu1 %v3909_v0  ;;  %v3347_v0 = vld [vmem:[#allocation8 + $0x20] ss:$16 sps:$4 sm:$0xff]   ;;  %v3415_v61 = vld [vmem:[#allocation8 + $0x344] ss:$16 sps:$4 sm:$0xff]  }
  0x72   :  { %482 = vmatprep.subr.bf16.mxu1 %v2923_v63  ;;  %2095 = vmatpush1.bf16.msra.mxu0 %v3335_v9  ;;  %v3413_v62 = vld [vmem:[#allocation8 + $0x340] ss:$16 sps:$4 sm:$0xff]   ;;  %v3421_v63 = vld [vmem:[#allocation8 + $0x324] ss:$16 sps:$4 sm:$0xff]  }
  0x73   :  { %2096 = vmatprep.subr.bf16.mxu0 %v3343_v10  ;;  %v3419_v1 = vld [vmem:[#allocation8 + $0x320] ss:$16 sps:$4 sm:$0xff]   ;;  %v3427_v2 = vld [vmem:[#allocation8 + $0x304] ss:$16 sps:$4 sm:$0xff]  }
  0x74   :  { %v3425_v3 = vld [vmem:[#allocation8 + $0x300] ss:$16 sps:$4 sm:$0xff]   ;;  %v3436_v4 = vld [vmem:[#allocation8 + $0x6e4] ss:$16 sps:$4 sm:$0xff]  }
  0x75   :  { %483 = vmatpush1.bf16.msra.mxu1 %v2922_v5  ;;  %v145_v5 = vlaneseq  ;;  %v3994_v8 = vld [vmem:[#allocation12] sm:$0xff] }
  0x76   :  { %484 = vmatprep.subr.bf16.mxu1 %v2915_v6  ;;  %2097 = vmatpush1.bf16.msra.mxu0 %v3341_v13 }
  0x77   :  { %2098 = vmatprep.subr.bf16.mxu0 %v3349_v15  ;;  %v3991_v6 = vshrl.u32 %v145_v5, 7  ;;  %v3449_v5 = vld [vmem:[#allocation8 + $0x400] ss:$16 sps:$4 sm:$0xff]  }
  0x79   :  { %485 = vmatpush1.bf16.msra.mxu1 %v2914_v11  ;;  %v147_v7 = vsub.s32 0, %v3991_v6  ;;  %v151_v9 = vsub.s32 1, %v3991_v6 }
  0x7a   :  { %486 = vmatprep.subr.bf16.mxu1 %v2907_v12  ;;  %2099 = vmatpush1.bf16.msra.mxu0 %v3347_v0 }
  0x7b   :  { %2100 = vmatprep.subr.bf16.mxu0 %v3355_v17  ;;  %v148_v10 = vrot.slane %v3994_v8, %v147_v7  ;;  %v152_v11 = vrot.slane %v3994_v8, %v151_v9 }
  0x7d   :  { %487 = vmatpush1.bf16.msra.mxu1 %v2906_v16 }
  0x7e   :  { %2127 = vmatprep.subr.bf16.mxu1 %v3340_v14  ;;  %2101 = vmatpush1.bf16.msra.mxu0 %v3353_v20  ;;  %v167_v14 = vsub.s32 5, %v3991_v6 }
  0x7f   :  { %2102 = vmatprep.subr.bf16.mxu0 %v3361_v21 }
  0x80   :  { %2935 = vmatmul.mubr.msk.bf16.vlgmr.msra.gmra.mxu1 %vm345_vm0, %v3979_v37  ;;  %v3385_v37 = vld [vmem:[#allocation8 + $0x164] ss:$16 sps:$4 sm:$0xff]  }
  0x81   :  { %2128 = vmatpush1.bf16.msra.mxu1 %v3338_v18 }
  0x82   :  { %2129 = vmatprep.subr.bf16.mxu1 %v3346_v19  ;;  %2103 = vmatpush2.bf16.msra.mxu0 %v3359_v24  ;;  %v168_v19 = vrot.slane %v3994_v8, %v167_v14 }
  0x83   :  { %2104 = vmatprep.subr.bf16.mxu0 %v3367_v25  ;;  %v3418_v25 = vld [vmem:[#allocation8 + $0x4c4] ss:$16 sps:$4 sm:$0xff]  }
  0x85   :  { %2130 = vmatpush1.bf16.msra.mxu1 %v3344_v22 }
  0x86   :  { %2131 = vmatprep.subr.bf16.mxu1 %v3352_v23  ;;  %2105 = vmatpush2.bf16.msra.mxu0 %v3365_v28  ;;  %v3410_v23 = vld [vmem:[#allocation8 + $0x4e0] ss:$16 sps:$4 sm:$0xff]  }
  0x87   :  { %2106 = vmatprep.subr.bf16.mxu0 %v3373_v29 }
  0x89   :  { %2132 = vmatpush1.bf16.msra.mxu1 %v3350_v26 }
  0x8a   :  { %2133 = vmatprep.subr.bf16.mxu1 %v3358_v27  ;;  %2107 = vmatpush2.bf16.msra.mxu0 %v3371_v32  ;;  %v155_v27 = vsub.s32 2, %v3991_v6 }
  0x8b   :  { %2108 = vmatprep.subr.bf16.mxu0 %v3379_v33  ;;  %v3424_v33 = vld [vmem:[#allocation8 + $0x4a4] ss:$16 sps:$4 sm:$0xff]  }
  0x8d   :  { %2134 = vmatpush1.bf16.msra.mxu1 %v3356_v30  ;;  %v3416_v30 = vld [vmem:[#allocation8 + $0x4c0] ss:$16 sps:$4 sm:$0xff]  }
  0x8e   :  { %2135 = vmatprep.subr.bf16.mxu1 %v3364_v31  ;;  %2109 = vmatpush2.bf16.msra.mxu0 %v3377_v36  ;;  %v159_v31 = vsub.s32 3, %v3991_v6 }
  0x8f   :  { %2110 = vmatprep.subr.bf16.mxu0 %v3385_v37  ;;  %v3422_v37 = vld [vmem:[#allocation8 + $0x4a0] ss:$16 sps:$4 sm:$0xff]  }
  0x91   :  { %2136 = vmatpush1.bf16.msra.mxu1 %v3362_v34 }
  0x92   :  { %2137 = vmatprep.subr.bf16.mxu1 %v3370_v35  ;;  %2111 = vmatpush2.bf16.msra.mxu0 %v3383_v40  ;;  %v156_v35 = vrot.slane %v3994_v8, %v155_v27  ;;  %v3430_v40 = vld [vmem:[#allocation8 + $0x484] ss:$16 sps:$4 sm:$0xff]  }
  0x93   :  { %2112 = vmatprep.subr.bf16.mxu0 %v3391_v41 }
  0x95   :  { %2138 = vmatpush1.bf16.msra.mxu1 %v3368_v38  ;;  %v160_v38 = vrot.slane %v3994_v8, %v159_v31 }
  0x96   :  { %2139 = vmatprep.subr.bf16.mxu1 %v3376_v39  ;;  %2113 = vmatpush2.bf16.msra.mxu0 %v3389_v44  ;;  %v3428_v44 = vld [vmem:[#allocation8 + $0x480] ss:$16 sps:$4 sm:$0xff]  }
  0x97   :  { %2114 = vmatprep.subr.bf16.mxu0 %v3397_v50 }
  0x99   :  { %2140 = vmatpush1.bf16.msra.mxu1 %v3374_v42 }
  0x9a   :  { %2141 = vmatprep.subr.bf16.mxu1 %v3382_v43  ;;  %2115 = vmatpush2.bf16.msra.mxu0 %v3395_v51  ;;  %v3431_v51 = vld [vmem:[#allocation8 + $0x460] ss:$16 sps:$4 sm:$0xff]  }
  0x9b   :  { %2116 = vmatprep.subr.bf16.mxu0 %v3403_v54  ;;  %v3439_v54 = vld [vmem:[#allocation8 + $0x444] ss:$16 sps:$4 sm:$0xff]  }
  0x9d   :  { %2142 = vmatpush1.bf16.msra.mxu1 %v3380_v45 }
  0x9e   :  { %2143 = vmatprep.subr.bf16.mxu1 %v3388_v46  ;;  %2117 = vmatpush2.bf16.msra.mxu0 %v3401_v55  ;;  %v3442_v55 = vld [vmem:[#allocation8 + $0x6c4] ss:$16 sps:$4 sm:$0xff]  }
  0x9f   :  { %2168 = vmatprep.subr.bf16.mxu0 %v3412_v57  ;;  %v3440_v57 = vld [vmem:[#allocation8 + $0x6c0] ss:$16 sps:$4 sm:$0xff]  }
  0xa1   :  { %2144 = vmatpush2.bf16.msra.mxu1 %v3386_v47  ;;  %v3433_v47 = vld [vmem:[#allocation8 + $0x464] ss:$16 sps:$4 sm:$0xff]  }
  0xa2   :  { %2145 = vmatprep.subr.bf16.mxu1 %v3394_v48 }
  0xa5   :  { %2146 = vmatpush2.bf16.msra.mxu1 %v3392_v49 }
  0xa6   :  { %2147 = vmatprep.subr.bf16.mxu1 %v3400_v52  ;;  %v3434_v52 = vld [vmem:[#allocation8 + $0x6e0] ss:$16 sps:$4 sm:$0xff]  }
  0xa9   :  { %2148 = vmatpush2.bf16.msra.mxu1 %v3398_v53 }
  0xaa   :  { %2149 = vmatprep.subr.bf16.mxu1 %v3406_v56  ;;  %v3437_v56 = vld [vmem:[#allocation8 + $0x440] ss:$16 sps:$4 sm:$0xff]  }
  0xad   :  { %2150 = vmatpush2.bf16.msra.mxu1 %v3404_v58  ;;  %v175_v58 = vsub.s32 7, %v3991_v6 }
  0xae   :  { %2151 = vmatprep.subr.bf16.mxu1 %v3409_v59  ;;  %v3445_v59 = vld [vmem:[#allocation8 + $0x424] ss:$16 sps:$4 sm:$0xff]  }
  0xb1   :  { %2152 = vmatpush2.bf16.msra.mxu1 %v3407_v60  ;;  %v3448_v60 = vld [vmem:[#allocation8 + $0x6a4] ss:$16 sps:$4 sm:$0xff]  }
  0xb2   :  { %2153 = vmatprep.subr.bf16.mxu1 %v3415_v61  ;;  %v3443_v61 = vld [vmem:[#allocation8 + $0x420] ss:$16 sps:$4 sm:$0xff]  }
  0xb5   :  { %2154 = vmatpush2.bf16.msra.mxu1 %v3413_v62  ;;  %v3446_v62 = vld [vmem:[#allocation8 + $0x6a0] ss:$16 sps:$4 sm:$0xff]  }
  0xb6   :  { %2155 = vmatprep.subr.bf16.mxu1 %v3421_v63  ;;  %v176_v63 = vrot.slane %v3994_v8, %v175_v58  ;;  %v3500_v58 = vld [vmem:[#allocation8 + $0x780] ss:$16 sps:$4 sm:$0xff]  }
  0xb9   :  { %2156 = vmatpush2.bf16.msra.mxu1 %v3419_v1  ;;  %v3451_v1 = vld [vmem:[#allocation8 + $0x404] ss:$16 sps:$4 sm:$0xff]  }
  0xba   :  { %2157 = vmatprep.subr.bf16.mxu1 %v3427_v2  ;;  %v3454_v2 = vld [vmem:[#allocation8 + $0x684] ss:$16 sps:$4 sm:$0xff]  }
  0xbd   :  { %2158 = vmatpush2.bf16.msra.mxu1 %v3425_v3 }
  0xbe   :  { %2209 = vmatprep.subr.bf16.mxu1 %v3436_v4 }
 0x120   :  { %v383_v12 = vpop.f32.mrf.mxu1  ;;  %v4005_v21 = vpop.f32.mrf.mxu0 }
 0x121   :  { %v384_v13 = vadd.f32 %v383_v12, %v148_v10  ;;  %v3452_v10 = vld [vmem:[#allocation8 + $0x680] ss:$16 sps:$4 sm:$0xff]   ;;  %v3457_v12 = vld [vmem:[#allocation8 + $0x5e4] ss:$16 sps:$4 sm:$0xff]  }
 0x122   :  { %v385_v15 = vpop.f32.mrf.mxu1  ;;  %v467_v26 = vpop.f32.mrf.mxu0 }
 0x123   :  { %v386_v16 = vadd.f32 %v385_v15, %v152_v11  ;;  %v513_v0 = vmax.f32 %v384_v13, 0.0  ;;  %v468_v28 = vadd.f32 %v467_v26, %v168_v19  ;;  %v3460_v13 = vld [vmem:[#allocation8 + $0x664] ss:$16 sps:$4 sm:$0xff]  }
 0x124   :  { %v387_v17 = vpop.f32.mrf.mxu1  ;;  %v469_v29 = vpop.f32.mrf.mxu0  ;;  %v3463_v19 = vld [vmem:[#allocation8 + $0x5c4] ss:$16 sps:$4 sm:$0xff]  }
 0x125   :  { %v514_v18 = vmax.f32 %v386_v16, 0.0  ;;  %v4009_v24 = vpack.c.bf16 %v513_v0, %v513_v0  ;;  %v518_v32 = vmax.f32 %v468_v28, 0.0  ;;  %v3455_v0 = vld [vmem:[#allocation8 + $0x5e0] ss:$16 sps:$4 sm:$0xff]   ;;  %v3469_v26 = vld [vmem:[#allocation8 + $0x5a4] ss:$16 sps:$4 sm:$0xff]  }
 0x126   :  { %v388_v20 = vpop.f32.mrf.mxu1  ;;  %v470_v34 = vpop.f32.mrf.mxu0  ;;  %v3458_v17 = vld [vmem:[#allocation8 + $0x660] ss:$16 sps:$4 sm:$0xff]   ;;  %v3472_v28 = vld [vmem:[#allocation8 + $0x624] ss:$16 sps:$4 sm:$0xff]  }
 0x127   :  { %v4007_v22 = vpack.c.bf16 %v514_v18, %v514_v18  ;;  %v4018_v36 = vpack.c.bf16 %v518_v32, %v518_v32  ;;  %v3466_v20 = vld [vmem:[#allocation8 + $0x644] ss:$16 sps:$4 sm:$0xff]   ;;  %v3467_v29 = vld [vmem:[#allocation8 + $0x5a0] ss:$16 sps:$4 sm:$0xff]  }
 0x128   :  { %v3475_v32 = vld [vmem:[#allocation8 + $0x584] ss:$16 sps:$4 sm:$0xff]   ;;  %v3473_v34 = vld [vmem:[#allocation8 + $0x580] ss:$16 sps:$4 sm:$0xff]  }
 0x129   :  { %2118 = vmatprep.mubr.bf16.mxu0 %v4007_v22 }
 0x12a   :  { %2119 = vmatmul.mubr.bf16.vlgmr.msra.gmra.mxu0 %v4009_v24 }
 0x12b   :  { %2169 = vmatpush1.bf16.msra.mxu0 %v3410_v23  ;;  %2200 = vmatprep.mubr.bf16.mxu0 %v4018_v36  ;;  %v3461_v23 = vld [vmem:[#allocation8 + $0x5c0] ss:$16 sps:$4 sm:$0xff]  }
 0x12c   :  { %2170 = vmatprep.subr.bf16.mxu0 %v3418_v25  ;;  %v3464_v25 = vld [vmem:[#allocation8 + $0x640] ss:$16 sps:$4 sm:$0xff]  }
 0x12f   :  { %2171 = vmatpush1.bf16.msra.mxu0 %v3416_v30  ;;  %v3470_v30 = vld [vmem:[#allocation8 + $0x620] ss:$16 sps:$4 sm:$0xff]  }
 0x130   :  { %v424_v39 = vpop.f32.mrf.mxu1  ;;  %2172 = vmatprep.subr.bf16.mxu0 %v3424_v33  ;;  %v3478_v33 = vld [vmem:[#allocation8 + $0x604] ss:$16 sps:$4 sm:$0xff]  }
 0x131   :  { %v425_v41 = vadd.f32 %v424_v39, %v156_v35  ;;  %v3476_v35 = vld [vmem:[#allocation8 + $0x600] ss:$16 sps:$4 sm:$0xff]   ;;  %v163_v39 = vsub.s32 4, %v3991_v6 }
 0x132   :  { %v426_v42 = vpop.f32.mrf.mxu1 }
 0x133   :  { %v427_v43 = vadd.f32 %v426_v42, %v160_v38  ;;  %2173 = vmatpush1.bf16.msra.mxu0 %v3422_v37  ;;  %v515_v45 = vmax.f32 %v425_v41, 0.0  ;;  %v3481_v37 = vld [vmem:[#allocation8 + $0x564] ss:$16 sps:$4 sm:$0xff]   ;;  %v3482_v41 = vld [vmem:[#allocation8 + $0x7e0] ss:$16 sps:$4 sm:$0xff]  }
 0x134   :  { %v428_v46 = vpop.f32.mrf.mxu1  ;;  %2174 = vmatprep.subr.bf16.mxu0 %v3430_v40  ;;  %v3484_v38 = vld [vmem:[#allocation8 + $0x7e4] ss:$16 sps:$4 sm:$0xff]   ;;  %v3479_v40 = vld [vmem:[#allocation8 + $0x560] ss:$16 sps:$4 sm:$0xff]  }
 0x135   :  { %v516_v48 = vmax.f32 %v427_v43, 0.0  ;;  %v4026_v53 = vpack.c.bf16 %v515_v45, %v515_v45  ;;  %v3487_v42 = vld [vmem:[#allocation8 + $0x544] ss:$16 sps:$4 sm:$0xff]   ;;  %v3485_v45 = vld [vmem:[#allocation8 + $0x540] ss:$16 sps:$4 sm:$0xff]  }
 0x136   :  { %v429_v49 = vpop.f32.mrf.mxu1  ;;  %v3490_v43 = vld [vmem:[#allocation8 + $0x7c4] ss:$16 sps:$4 sm:$0xff]   ;;  %v3488_v46 = vld [vmem:[#allocation8 + $0x7c0] ss:$16 sps:$4 sm:$0xff]  }
 0x137   :  { %v4024_v50 = vpack.c.bf16 %v516_v48, %v516_v48  ;;  %2175 = vmatpush1.bf16.msra.mxu0 %v3428_v44  ;;  %v164_v44 = vrot.slane %v3994_v8, %v163_v39  ;;  %v3496_v48 = vld [vmem:[#allocation8 + $0x7a4] ss:$16 sps:$4 sm:$0xff]   ;;  %v3545_v39 = vld [vmem:[#allocation8 + $0x8] ss:$16 sps:$4 sm:$0xff]  }
 0x138   :  { %2176 = vmatprep.subr.bf16.mxu0 %v3433_v47  ;;  %v3493_v47 = vld [vmem:[#allocation8 + $0x524] ss:$16 sps:$4 sm:$0xff]  }
 0x139   :  { %2159 = vmatprep.mubr.bf16.mxu1 %v4024_v50  ;;  %v466_v49 = vadd.f32 %v4005_v21, %v164_v44  ;;  %v3503_v21 = vld [vmem:[#allocation8 + $0x760] ss:$16 sps:$4 sm:$0xff]   ;;  %v3559_v44 = vld [vmem:[#allocation8 + $0x1cc] ss:$16 sps:$4 sm:$0xff]  }
 0x13a   :  { %2160 = vmatmul.mubr.bf16.vlgmr.msra.gmra.mxu1 %v4026_v53 }
 0x13b   :  { %2177 = vmatpush1.bf16.msra.mxu0 %v3431_v51  ;;  %2210 = vmatpush1.bf16.msra.mxu1 %v3434_v52  ;;  %v3491_v51 = vld [vmem:[#allocation8 + $0x520] ss:$16 sps:$4 sm:$0xff]  }
 0x13c   :  { %2178 = vmatprep.subr.bf16.mxu0 %v3439_v54  ;;  %2211 = vmatprep.subr.bf16.mxu1 %v3442_v55  ;;  %v3494_v52 = vld [vmem:[#allocation8 + $0x7a0] ss:$16 sps:$4 sm:$0xff]   ;;  %v3499_v54 = vld [vmem:[#allocation8 + $0x504] ss:$16 sps:$4 sm:$0xff]  }
 0x13d   :  { %v3502_v55 = vld [vmem:[#allocation8 + $0x784] ss:$16 sps:$4 sm:$0xff]  }
 0x13f   :  { %2179 = vmatpush1.bf16.msra.mxu0 %v3437_v56  ;;  %2212 = vmatpush1.bf16.msra.mxu1 %v3440_v57  ;;  %v517_v56 = vmax.f32 %v466_v49, 0.0  ;;  %v3497_v57 = vld [vmem:[#allocation8 + $0x500] ss:$16 sps:$4 sm:$0xff]   ;;  %v3568_v49 = vld [vmem:[#allocation8 + $0x22c] ss:$16 sps:$4 sm:$0xff]  }
 0x140   :  { %2180 = vmatprep.subr.bf16.mxu0 %v3445_v59  ;;  %2213 = vmatprep.subr.bf16.mxu1 %v3448_v60  ;;  %v4032_v3 = vpop.f32.mrf.mxu1  ;;  %v3505_v59 = vld [vmem:[#allocation8 + $0x764] ss:$16 sps:$4 sm:$0xff]   ;;  %v3508_v60 = vld [vmem:[#allocation8 + $0xec] ss:$16 sps:$4 sm:$0xff]  }
 0x142   :  { %v508_v4 = vpop.f32.mrf.mxu1 }
 0x143   :  { %2181 = vmatpush1.bf16.msra.mxu0 %v3443_v61  ;;  %2214 = vmatpush1.bf16.msra.mxu1 %v3446_v62  ;;  %v509_v11 = vadd.f32 %v508_v4, %v176_v63  ;;  %v4040_v61 = vpack.c.bf16 %v517_v56, %v517_v56  ;;  %v3506_v62 = vld [vmem:[#allocation8 + $0xe8] ss:$16 sps:$4 sm:$0xff]   ;;  %v171_v63 = vsub.s32 6, %v3991_v6  ;;  %v3509_v4 = vld [vmem:[#allocation8 + $0x740] ss:$16 sps:$4 sm:$0xff]  }
 0x144   :  { %2182 = vmatprep.subr.bf16.mxu0 %v3451_v1  ;;  %2215 = vmatprep.subr.bf16.mxu1 %v3454_v2  ;;  %v510_v14 = vpop.f32.mrf.mxu1  ;;  %v3511_v1 = vld [vmem:[#allocation8 + $0x744] ss:$16 sps:$4 sm:$0xff]   ;;  %v3514_v2 = vld [vmem:[#allocation8 + $0xcc] ss:$16 sps:$4 sm:$0xff]   ;;  %v3569_v56 = vld [vmem:[#allocation8 + $0x188] ss:$16 sps:$4 sm:$0xff]  }
 0x145   :  { %v520_v15 = vmax.f32 %v509_v11, 0.0  ;;  %v3517_v11 = vld [vmem:[#allocation8 + $0x724] ss:$16 sps:$4 sm:$0xff]   ;;  %v3518_v14 = vld [vmem:[#allocation8 + $0xa8] ss:$16 sps:$4 sm:$0xff]  }
 0x146   :  { %v511_v16 = vpop.f32.mrf.mxu1 }
 0x147   :  { %2183 = vmatpush1.bf16.msra.mxu0 %v3449_v5  ;;  %2216 = vmatpush1.bf16.msra.mxu1 %v3452_v10  ;;  %v4034_v18 = vpack.c.bf16 %v520_v15, %v520_v15  ;;  %v3512_v5 = vld [vmem:[#allocation8 + $0xc8] ss:$16 sps:$4 sm:$0xff]   ;;  %v172_v10 = vrot.slane %v3994_v8, %v171_v63  ;;  %v3523_v16 = vld [vmem:[#allocation8 + $0x704] ss:$16 sps:$4 sm:$0xff]   ;;  %v3586_v63 = vld [vmem:[#allocation8 + $0x3cc] ss:$16 sps:$4 sm:$0xff]  }
 0x148   :  { %2184 = vmatprep.subr.bf16.mxu0 %v3457_v12  ;;  %2217 = vmatprep.subr.bf16.mxu1 %v3460_v13  ;;  %v3520_v12 = vld [vmem:[#allocation8 + $0xac] ss:$16 sps:$4 sm:$0xff]   ;;  %v3515_v13 = vld [vmem:[#allocation8 + $0x720] ss:$16 sps:$4 sm:$0xff]   ;;  %v3524_v8 = vld [vmem:[#allocation8 + $0x88] ss:$16 sps:$4 sm:$0xff]  }
 0x149   :  { %2241 = vmatprep.mubr.bf16.mxu1 %v4034_v18  ;;  %v507_v15 = vadd.f32 %v4032_v3, %v172_v10  ;;  %v3535_v3 = vld [vmem:[#allocation8 + $0x4c] ss:$16 sps:$4 sm:$0xff]   ;;  %v3587_v10 = vld [vmem:[#allocation8 + $0x128] ss:$16 sps:$4 sm:$0xff]  }
 0x14b   :  { %2185 = vmatpush2.bf16.msra.mxu0 %v3455_v0  ;;  %2218 = vmatpush1.bf16.msra.mxu1 %v3458_v17  ;;  %v3526_v0 = vld [vmem:[#allocation8 + $0x8c] ss:$16 sps:$4 sm:$0xff]   ;;  %v3521_v17 = vld [vmem:[#allocation8 + $0x700] ss:$16 sps:$4 sm:$0xff]  }
 0x14c   :  { %2186 = vmatprep.subr.bf16.mxu0 %v3463_v19  ;;  %2219 = vmatprep.subr.bf16.mxu1 %v3466_v20  ;;  %v519_v19 = vmax.f32 %v507_v15, 0.0  ;;  %v3532_v20 = vld [vmem:[#allocation8 + $0x2ec] ss:$16 sps:$4 sm:$0xff]   ;;  %v3596_v15 = vld [vmem:[#allocation8 + $0x388] ss:$16 sps:$4 sm:$0xff]  }
 0x14f   :  { %2187 = vmatpush2.bf16.msra.mxu0 %v3461_v23  ;;  %2220 = vmatpush1.bf16.msra.mxu1 %v3464_v25  ;;  %v3527_v23 = vld [vmem:[#allocation8 + $0x68] ss:$16 sps:$4 sm:$0xff]  }
 0x150   :  { %2188 = vmatprep.subr.bf16.mxu0 %v3469_v26  ;;  %2221 = vmatprep.subr.bf16.mxu1 %v3472_v28  ;;  %v3530_v25 = vld [vmem:[#allocation8 + $0x2e8] ss:$16 sps:$4 sm:$0xff]   ;;  %v4047_v26 = vpack.c.bf16 %v519_v19, %v519_v19  ;;  %v3538_v28 = vld [vmem:[#allocation8 + $0x2cc] ss:$16 sps:$4 sm:$0xff]  }
 0x151   :  { %v3607_v19 = vld [vmem:[#allocation8 + $0x34c] ss:$16 sps:$4 sm:$0xff]  }
 0x153   :  { %2189 = vmatpush2.bf16.msra.mxu0 %v3467_v29  ;;  %2222 = vmatpush1.bf16.msra.mxu1 %v3470_v30  ;;  %v3533_v29 = vld [vmem:[#allocation8 + $0x48] ss:$16 sps:$4 sm:$0xff]  }
 0x154   :  { %2190 = vmatprep.subr.bf16.mxu0 %v3475_v32  ;;  %2223 = vmatprep.subr.bf16.mxu1 %v3478_v33  ;;  %v3536_v30 = vld [vmem:[#allocation8 + $0x2c8] ss:$16 sps:$4 sm:$0xff]   ;;  %v3541_v32 = vld [vmem:[#allocation8 + $0x2c] ss:$16 sps:$4 sm:$0xff]  }
 0x155   :  { %v3544_v33 = vld [vmem:[#allocation8 + $0x2ac] ss:$16 sps:$4 sm:$0xff]  }
 0x157   :  { %2191 = vmatpush2.bf16.msra.mxu0 %v3473_v34  ;;  %2224 = vmatpush1.bf16.msra.mxu1 %v3476_v35  ;;  %v3539_v34 = vld [vmem:[#allocation8 + $0x28] ss:$16 sps:$4 sm:$0xff]  }
 0x158   :  { %2192 = vmatprep.subr.bf16.mxu0 %v3481_v37  ;;  %2225 = vmatprep.subr.bf16.mxu1 %v3484_v38  ;;  %v3542_v35 = vld [vmem:[#allocation8 + $0x2a8] ss:$16 sps:$4 sm:$0xff]   ;;  %v3547_v37 = vld [vmem:[#allocation8 + $0xc] ss:$16 sps:$4 sm:$0xff]  }
 0x159   :  { %v3550_v38 = vld [vmem:[#allocation8 + $0x28c] ss:$16 sps:$4 sm:$0xff]  }
 0x15b   :  { %2193 = vmatpush2.bf16.msra.mxu0 %v3479_v40  ;;  %2226 = vmatpush2.bf16.msra.mxu1 %v3482_v41  ;;  %v3548_v40 = vld [vmem:[#allocation8 + $0x288] ss:$16 sps:$4 sm:$0xff]   ;;  %v3553_v41 = vld [vmem:[#allocation8 + $0x1ec] ss:$16 sps:$4 sm:$0xff]  }
 0x15c   :  { %2194 = vmatprep.subr.bf16.mxu0 %v3487_v42  ;;  %2227 = vmatprep.subr.bf16.mxu1 %v3490_v43  ;;  %v3551_v42 = vld [vmem:[#allocation8 + $0x1e8] ss:$16 sps:$4 sm:$0xff]  }
 0x15d   :  { %v3554_v43 = vld [vmem:[#allocation8 + $0x268] ss:$16 sps:$4 sm:$0xff]  }
 0x15f   :  { %2195 = vmatpush2.bf16.msra.mxu0 %v3485_v45  ;;  %2228 = vmatpush2.bf16.msra.mxu1 %v3488_v46  ;;  %v3562_v45 = vld [vmem:[#allocation8 + $0x24c] ss:$16 sps:$4 sm:$0xff]   ;;  %v3557_v46 = vld [vmem:[#allocation8 + $0x1c8] ss:$16 sps:$4 sm:$0xff]  }
 0x160   :  { %2196 = vmatprep.subr.bf16.mxu0 %v3493_v47  ;;  %2229 = vmatprep.subr.bf16.mxu1 %v3496_v48  ;;  %v3560_v47 = vld [vmem:[#allocation8 + $0x248] ss:$16 sps:$4 sm:$0xff]   ;;  %v3565_v48 = vld [vmem:[#allocation8 + $0x1ac] ss:$16 sps:$4 sm:$0xff]  }
 0x163   :  { %2197 = vmatpush2.bf16.msra.mxu0 %v3491_v51  ;;  %2230 = vmatpush2.bf16.msra.mxu1 %v3494_v52  ;;  %v3563_v51 = vld [vmem:[#allocation8 + $0x1a8] ss:$16 sps:$4 sm:$0xff]  }
 0x164   :  { %2198 = vmatprep.subr.bf16.mxu0 %v3499_v54  ;;  %2231 = vmatprep.subr.bf16.mxu1 %v3502_v55  ;;  %v3566_v52 = vld [vmem:[#allocation8 + $0x228] ss:$16 sps:$4 sm:$0xff]   ;;  %v3571_v54 = vld [vmem:[#allocation8 + $0x18c] ss:$16 sps:$4 sm:$0xff]  }
 0x165   :  { %v3574_v55 = vld [vmem:[#allocation8 + $0x20c] ss:$16 sps:$4 sm:$0xff]  }
 0x167   :  { %2199 = vmatpush2.bf16.msra.mxu0 %v3497_v57  ;;  %2232 = vmatpush2.bf16.msra.mxu1 %v3500_v58  ;;  %v3572_v57 = vld [vmem:[#allocation8 + $0x208] ss:$16 sps:$4 sm:$0xff]   ;;  %v3577_v58 = vld [vmem:[#allocation8 + $0x16c] ss:$16 sps:$4 sm:$0xff]  }
 0x168   :  { %2233 = vmatprep.subr.bf16.mxu1 %v3505_v59  ;;  %2250 = vmatprep.subr.bf16.mxu0 %v3508_v60  ;;  %v3580_v59 = vld [vmem:[#allocation8 + $0x3ec] ss:$16 sps:$4 sm:$0xff]   ;;  %v3575_v60 = vld [vmem:[#allocation8 + $0x168] ss:$16 sps:$4 sm:$0xff]  }
 0x16a   :  { %2201 = vmatmul.mubr.bf16.vlgmr.msra.gmra.mxu0 %v4040_v61 }
 0x16b   :  { %2234 = vmatpush2.bf16.msra.mxu1 %v3503_v21  ;;  %2251 = vmatpush1.bf16.msra.mxu0 %v3506_v62  ;;  %v3578_v21 = vld [vmem:[#allocation8 + $0x3e8] ss:$16 sps:$4 sm:$0xff]   ;;  %v3583_v62 = vld [vmem:[#allocation8 + $0x14c] ss:$16 sps:$4 sm:$0xff]  }
 0x16c   :  { %2282 = vmatprep.mubr.bf16.mxu0 %v4007_v22  ;;  %2235 = vmatprep.subr.bf16.mxu1 %v3511_v1  ;;  %v3529_v22 = vld [vmem:[#allocation8 + $0x6c] ss:$16 sps:$4 sm:$0xff]   ;;  %v3581_v1 = vld [vmem:[#allocation8 + $0x148] ss:$16 sps:$4 sm:$0xff]  }
 0x16d   :  { %2252 = vmatprep.subr.bf16.mxu0 %v3514_v2  ;;  %v3584_v2 = vld [vmem:[#allocation8 + $0x3c8] ss:$16 sps:$4 sm:$0xff]  }
 0x16f   :  { %2236 = vmatpush2.bf16.msra.mxu1 %v3509_v4  ;;  %2253 = vmatpush1.bf16.msra.mxu0 %v3512_v5  ;;  %v3589_v4 = vld [vmem:[#allocation8 + $0x12c] ss:$16 sps:$4 sm:$0xff]  }
 0x170   :  { %2237 = vmatprep.subr.bf16.mxu1 %v3517_v11  ;;  %2254 = vmatprep.subr.bf16.mxu0 %v3520_v12  ;;  %v3592_v5 = vld [vmem:[#allocation8 + $0x3ac] ss:$16 sps:$4 sm:$0xff]   ;;  %v3590_v11 = vld [vmem:[#allocation8 + $0x3a8] ss:$16 sps:$4 sm:$0xff]  }
 0x171   :  { %v3595_v12 = vld [vmem:[#allocation8 + $0x10c] ss:$16 sps:$4 sm:$0xff]  }
 0x173   :  { %2238 = vmatpush2.bf16.msra.mxu1 %v3515_v13  ;;  %2255 = vmatpush1.bf16.msra.mxu0 %v3518_v14  ;;  %v3598_v13 = vld [vmem:[#allocation8 + $0x38c] ss:$16 sps:$4 sm:$0xff]   ;;  %v3593_v14 = vld [vmem:[#allocation8 + $0x108] ss:$16 sps:$4 sm:$0xff]  }
 0x174   :  { %2239 = vmatprep.subr.bf16.mxu1 %v3523_v16  ;;  %2256 = vmatprep.subr.bf16.mxu0 %v3526_v0  ;;  %v3601_v16 = vld [vmem:[#allocation8 + $0x36c] ss:$16 sps:$4 sm:$0xff]  }
 0x175   :  { %v3604_v0 = vld [vmem:[#allocation8 + $0x4ec] ss:$16 sps:$4 sm:$0xff]  }
 0x177   :  { %2240 = vmatpush2.bf16.msra.mxu1 %v3521_v17  ;;  %2257 = vmatpush1.bf16.msra.mxu0 %v3524_v8  ;;  %v3599_v17 = vld [vmem:[#allocation8 + $0x368] ss:$16 sps:$4 sm:$0xff]  }
 0x178   :  { %2258 = vmatprep.subr.bf16.mxu0 %v3529_v22  ;;  %2291 = vmatprep.subr.bf16.mxu1 %v3532_v20  ;;  %v3602_v8 = vld [vmem:[#allocation8 + $0x4e8] ss:$16 sps:$4 sm:$0xff]   ;;  %v3610_v22 = vld [vmem:[#allocation8 + $0x4cc] ss:$16 sps:$4 sm:$0xff]  }
 0x179   :  { %v3605_v20 = vld [vmem:[#allocation8 + $0x348] ss:$16 sps:$4 sm:$0xff]  }
 0x17a   :  { %2242 = vmatmul.mubr.bf16.vlgmr.msra.gmra.mxu1 %v4047_v26 }
 0x17b   :  { %2259 = vmatpush1.bf16.msra.mxu0 %v3527_v23  ;;  %2292 = vmatpush1.bf16.msra.mxu1 %v3530_v25  ;;  %v3608_v23 = vld [vmem:[#allocation8 + $0x4c8] ss:$16 sps:$4 sm:$0xff]   ;;  %v3613_v25 = vld [vmem:[#allocation8 + $0x32c] ss:$16 sps:$4 sm:$0xff]  }
 0x17c   :  { %2323 = vmatprep.mubr.bf16.mxu1 %v4024_v50  ;;  %2260 = vmatprep.subr.bf16.mxu0 %v3535_v3  ;;  %v3556_v50 = vld [vmem:[#allocation8 + $0x26c] ss:$16 sps:$4 sm:$0xff]  }
 0x17d   :  { %2293 = vmatprep.subr.bf16.mxu1 %v3538_v28  ;;  %v3616_v3 = vld [vmem:[#allocation8 + $0x4ac] ss:$16 sps:$4 sm:$0xff]   ;;  %v3611_v28 = vld [vmem:[#allocation8 + $0x328] ss:$16 sps:$4 sm:$0xff]  }
 0x17f   :  { %2261 = vmatpush1.bf16.msra.mxu0 %v3533_v29  ;;  %2294 = vmatpush1.bf16.msra.mxu1 %v3536_v30  ;;  %v3614_v29 = vld [vmem:[#allocation8 + $0x4a8] ss:$16 sps:$4 sm:$0xff]   ;;  %v3619_v30 = vld [vmem:[#allocation8 + $0x30c] ss:$16 sps:$4 sm:$0xff]  }
 0x180   :  { %2262 = vmatprep.subr.bf16.mxu0 %v3541_v32  ;;  %2295 = vmatprep.subr.bf16.mxu1 %v3544_v33  ;;  %v3622_v32 = vld [vmem:[#allocation8 + $0x48c] ss:$16 sps:$4 sm:$0xff]   ;;  %v3620_v33 = vld [vmem:[#allocation8 + $0x488] ss:$16 sps:$4 sm:$0xff]  }
 0x183   :  { %2263 = vmatpush1.bf16.msra.mxu0 %v3539_v34  ;;  %2296 = vmatpush1.bf16.msra.mxu1 %v3542_v35  ;;  %v3625_v34 = vld [vmem:[#allocation8 + $0x46c] ss:$16 sps:$4 sm:$0xff]   ;;  %v3623_v35 = vld [vmem:[#allocation8 + $0x468] ss:$16 sps:$4 sm:$0xff]  }
 0x184   :  { %2264 = vmatprep.subr.bf16.mxu0 %v3547_v37  ;;  %2297 = vmatprep.subr.bf16.mxu1 %v3550_v38  ;;  %v3626_v37 = vld [vmem:[#allocation8 + $0x6e8] ss:$16 sps:$4 sm:$0xff]   ;;  %v3631_v38 = vld [vmem:[#allocation8 + $0x44c] ss:$16 sps:$4 sm:$0xff]  }
 0x187   :  { %2265 = vmatpush1.bf16.msra.mxu0 %v3545_v39  ;;  %2298 = vmatpush1.bf16.msra.mxu1 %v3548_v40  ;;  %v3634_v39 = vld [vmem:[#allocation8 + $0x6cc] ss:$16 sps:$4 sm:$0xff]   ;;  %v3629_v40 = vld [vmem:[#allocation8 + $0x448] ss:$16 sps:$4 sm:$0xff]  }
 0x188   :  { %2266 = vmatprep.subr.bf16.mxu0 %v3553_v41  ;;  %2299 = vmatprep.subr.bf16.mxu1 %v3556_v50  ;;  %v3632_v41 = vld [vmem:[#allocation8 + $0x6c8] ss:$16 sps:$4 sm:$0xff]   ;;  %v3637_v50 = vld [vmem:[#allocation8 + $0x42c] ss:$16 sps:$4 sm:$0xff]  }
 0x18b   :  { %2267 = vmatpush2.bf16.msra.mxu0 %v3551_v42  ;;  %2300 = vmatpush1.bf16.msra.mxu1 %v3554_v43  ;;  %v3640_v42 = vld [vmem:[#allocation8 + $0x6ac] ss:$16 sps:$4 sm:$0xff]   ;;  %v3635_v43 = vld [vmem:[#allocation8 + $0x428] ss:$16 sps:$4 sm:$0xff]  }
 0x18c   :  { %2268 = vmatprep.subr.bf16.mxu0 %v3559_v44  ;;  %2301 = vmatprep.subr.bf16.mxu1 %v3562_v45  ;;  %v3638_v44 = vld [vmem:[#allocation8 + $0x6a8] ss:$16 sps:$4 sm:$0xff]   ;;  %v3643_v45 = vld [vmem:[#allocation8 + $0x40c] ss:$16 sps:$4 sm:$0xff]  }
 0x18f   :  { %2269 = vmatpush2.bf16.msra.mxu0 %v3557_v46  ;;  %2302 = vmatpush1.bf16.msra.mxu1 %v3560_v47  ;;  %v3646_v46 = vld [vmem:[#allocation8 + $0x68c] ss:$16 sps:$4 sm:$0xff]   ;;  %v3644_v47 = vld [vmem:[#allocation8 + $0x688] ss:$16 sps:$4 sm:$0xff]  }
 0x190   :  { %2270 = vmatprep.subr.bf16.mxu0 %v3565_v48  ;;  %2303 = vmatprep.subr.bf16.mxu1 %v3568_v49  ;;  %v3649_v48 = vld [vmem:[#allocation8 + $0x5ec] ss:$16 sps:$4 sm:$0xff]   ;;  %v3647_v49 = vld [vmem:[#allocation8 + $0x5e8] ss:$16 sps:$4 sm:$0xff]  }
 0x193   :  { %2271 = vmatpush2.bf16.msra.mxu0 %v3563_v51  ;;  %2304 = vmatpush1.bf16.msra.mxu1 %v3566_v52  ;;  %v3650_v51 = vld [vmem:[#allocation8 + $0x668] ss:$16 sps:$4 sm:$0xff]   ;;  %v3655_v52 = vld [vmem:[#allocation8 + $0x5cc] ss:$16 sps:$4 sm:$0xff]  }
 0x194   :  { %2272 = vmatprep.subr.bf16.mxu0 %v3571_v54  ;;  %2305 = vmatprep.subr.bf16.mxu1 %v3574_v55  ;;  %v3658_v54 = vld [vmem:[#allocation8 + $0x64c] ss:$16 sps:$4 sm:$0xff]   ;;  %v3653_v55 = vld [vmem:[#allocation8 + $0x5c8] ss:$16 sps:$4 sm:$0xff]  }
 0x197   :  { %2273 = vmatpush2.bf16.msra.mxu0 %v3569_v56  ;;  %2306 = vmatpush1.bf16.msra.mxu1 %v3572_v57  ;;  %v3656_v56 = vld [vmem:[#allocation8 + $0x648] ss:$16 sps:$4 sm:$0xff]   ;;  %v3661_v57 = vld [vmem:[#allocation8 + $0x5ac] ss:$16 sps:$4 sm:$0xff]  }
 0x198   :  { %2274 = vmatprep.subr.bf16.mxu0 %v3577_v58  ;;  %2307 = vmatprep.subr.bf16.mxu1 %v3580_v59  ;;  %v3664_v58 = vld [vmem:[#allocation8 + $0x62c] ss:$16 sps:$4 sm:$0xff]   ;;  %v3659_v59 = vld [vmem:[#allocation8 + $0x5a8] ss:$16 sps:$4 sm:$0xff]  }
 0x19b   :  { %2275 = vmatpush2.bf16.msra.mxu0 %v3575_v60  ;;  %2308 = vmatpush2.bf16.msra.mxu1 %v3578_v21  ;;  %v3662_v60 = vld [vmem:[#allocation8 + $0x628] ss:$16 sps:$4 sm:$0xff]   ;;  %v3667_v21 = vld [vmem:[#allocation8 + $0x58c] ss:$16 sps:$4 sm:$0xff]  }
 0x19c   :  { %2276 = vmatprep.subr.bf16.mxu0 %v3583_v62  ;;  %2309 = vmatprep.subr.bf16.mxu1 %v3586_v63  ;;  %v3670_v62 = vld [vmem:[#allocation8 + $0x60c] ss:$16 sps:$4 sm:$0xff]   ;;  %v3665_v63 = vld [vmem:[#allocation8 + $0x588] ss:$16 sps:$4 sm:$0xff]  }
 0x19f   :  { %2277 = vmatpush2.bf16.msra.mxu0 %v3581_v1  ;;  %2310 = vmatpush2.bf16.msra.mxu1 %v3584_v2  ;;  %v3668_v1 = vld [vmem:[#allocation8 + $0x608] ss:$16 sps:$4 sm:$0xff]   ;;  %v3673_v2 = vld [vmem:[#allocation8 + $0x56c] ss:$16 sps:$4 sm:$0xff]  }
 0x1a0   :  { %2278 = vmatprep.subr.bf16.mxu0 %v3589_v4  ;;  %2311 = vmatprep.subr.bf16.mxu1 %v3592_v5  ;;  %v3676_v4 = vld [vmem:[#allocation8 + $0x7ec] ss:$16 sps:$4 sm:$0xff]   ;;  %v3671_v5 = vld [vmem:[#allocation8 + $0x568] ss:$16 sps:$4 sm:$0xff]  }
 0x1a3   :  { %2279 = vmatpush2.bf16.msra.mxu0 %v3587_v10  ;;  %2312 = vmatpush2.bf16.msra.mxu1 %v3590_v11  ;;  %v3674_v10 = vld [vmem:[#allocation8 + $0x7e8] ss:$16 sps:$4 sm:$0xff]   ;;  %v3679_v11 = vld [vmem:[#allocation8 + $0x54c] ss:$16 sps:$4 sm:$0xff]  }
 0x1a4   :  { %2280 = vmatprep.subr.bf16.mxu0 %v3595_v12  ;;  %2313 = vmatprep.subr.bf16.mxu1 %v3598_v13  ;;  %v3682_v12 = vld [vmem:[#allocation8 + $0x7cc] ss:$16 sps:$4 sm:$0xff]   ;;  %v3677_v13 = vld [vmem:[#allocation8 + $0x548] ss:$16 sps:$4 sm:$0xff]  }
 0x1a7   :  { %2281 = vmatpush2.bf16.msra.mxu0 %v3593_v14  ;;  %2314 = vmatpush2.bf16.msra.mxu1 %v3596_v15  ;;  %v3680_v14 = vld [vmem:[#allocation8 + $0x7c8] ss:$16 sps:$4 sm:$0xff]   ;;  %v3685_v15 = vld [vmem:[#allocation8 + $0x52c] ss:$16 sps:$4 sm:$0xff]  }
 0x1a8   :  { %2315 = vmatprep.subr.bf16.mxu1 %v3601_v16  ;;  %2332 = vmatprep.subr.bf16.mxu0 %v3604_v0  ;;  %v3688_v16 = vld [vmem:[#allocation8 + $0x7ac] ss:$16 sps:$4 sm:$0xff]   ;;  %v3683_v0 = vld [vmem:[#allocation8 + $0x528] ss:$16 sps:$4 sm:$0xff]  }
 0x1aa   :  { %2283 = vmatmul.mubr.bf16.vlgmr.msra.gmra.mxu0 %v4009_v24  ;;  %v3617_v24 = vld [vmem:[#allocation8 + $0x308] ss:$16 sps:$4 sm:$0xff]  }
 0x1ab   :  { %2316 = vmatpush2.bf16.msra.mxu1 %v3599_v17  ;;  %2333 = vmatpush1.bf16.msra.mxu0 %v3602_v8  ;;  %v3686_v17 = vld [vmem:[#allocation8 + $0x7a8] ss:$16 sps:$4 sm:$0xff]   ;;  %v3691_v8 = vld [vmem:[#allocation8 + $0x50c] ss:$16 sps:$4 sm:$0xff]  }
 0x1ac   :  { %2364 = vmatprep.mubr.bf16.mxu0 %v4018_v36  ;;  %2317 = vmatprep.subr.bf16.mxu1 %v3607_v19  ;;  %v3628_v36 = vld [vmem:[#allocation8 + $0x6ec] ss:$16 sps:$4 sm:$0xff]  }
 0x1ad   :  { %2334 = vmatprep.subr.bf16.mxu0 %v3610_v22  ;;  %v3694_v19 = vld [vmem:[#allocation8 + $0x78c] ss:$16 sps:$4 sm:$0xff]   ;;  %v3689_v22 = vld [vmem:[#allocation8 + $0x508] ss:$16 sps:$4 sm:$0xff]  }
 0x1af   :  { %2318 = vmatpush2.bf16.msra.mxu1 %v3605_v20  ;;  %2335 = vmatpush1.bf16.msra.mxu0 %v3608_v23  ;;  %v3692_v20 = vld [vmem:[#allocation8 + $0x788] ss:$16 sps:$4 sm:$0xff]   ;;  %v3697_v23 = vld [vmem:[#allocation8 + $0x76c] ss:$16 sps:$4 sm:$0xff]  }
 0x1b0   :  { %2319 = vmatprep.subr.bf16.mxu1 %v3613_v25  ;;  %2336 = vmatprep.subr.bf16.mxu0 %v3616_v3  ;;  %v3707_v25 = vld [vmem:[#allocation9 + $0x78] sm:$0xff]  }
 0x1b1   :  { %v3695_v3 = vld [vmem:[#allocation8 + $0x768] ss:$16 sps:$4 sm:$0xff]  }
 0x1b3   :  { %2320 = vmatpush2.bf16.msra.mxu1 %v3611_v28  ;;  %2337 = vmatpush1.bf16.msra.mxu0 %v3614_v29  ;;  %v3708_v28 = vld [vmem:[#allocation9 + $0x38] sm:$0xff]  }
 0x1b4   :  { %2321 = vmatprep.subr.bf16.mxu1 %v3619_v30  ;;  %2338 = vmatprep.subr.bf16.mxu0 %v3622_v32  ;;  %v3700_v29 = vld [vmem:[#allocation8 + $0x74c] ss:$16 sps:$4 sm:$0xff]   ;;  %v3709_v30 = vld [vmem:[#allocation9 + $0x70] sm:$0xff]  }
 0x1b7   :  { %2322 = vmatpush2.bf16.msra.mxu1 %v3617_v24  ;;  %2339 = vmatpush1.bf16.msra.mxu0 %v3620_v33  ;;  %v3698_v24 = vld [vmem:[#allocation8 + $0x748] ss:$16 sps:$4 sm:$0xff]   ;;  %v3710_v33 = vld [vmem:[#allocation9 + $0x30] sm:$0xff]  }
 0x1b8   :  { %2340 = vmatprep.subr.bf16.mxu0 %v3625_v34  ;;  %2373 = vmatprep.subr.bf16.mxu1 %v3628_v36  ;;  %v3703_v36 = vld [vmem:[#allocation8 + $0x72c] ss:$16 sps:$4 sm:$0xff]  }
 0x1ba   :  { %2324 = vmatmul.mubr.bf16.vlgmr.msra.gmra.mxu1 %v4026_v53  ;;  %v3641_v53 = vld [vmem:[#allocation8 + $0x408] ss:$16 sps:$4 sm:$0xff]  }
 0x1bb   :  { %2341 = vmatpush1.bf16.msra.mxu0 %v3623_v35  ;;  %2374 = vmatpush1.bf16.msra.mxu1 %v3626_v37  ;;  %v3711_v35 = vld [vmem:[#allocation9 + $0x68] sm:$0xff]  }
 0x1bc   :  { %2405 = vmatprep.mubr.bf16.mxu1 %v4034_v18  ;;  %2342 = vmatprep.subr.bf16.mxu0 %v3631_v38  ;;  %v3652_v18 = vld [vmem:[#allocation8 + $0x66c] ss:$16 sps:$4 sm:$0xff]   ;;  %v3701_v38 = vld [vmem:[#allocation8 + $0x728] ss:$16 sps:$4 sm:$0xff]  }
 0x1bd   :  { %2375 = vmatprep.subr.bf16.mxu1 %v3634_v39  ;;  %v3712_v39 = vld [vmem:[#allocation9 + $0x28] sm:$0xff]  }
 0x1bf   :  { %2343 = vmatpush1.bf16.msra.mxu0 %v3629_v40  ;;  %2376 = vmatpush1.bf16.msra.mxu1 %v3632_v41  ;;  %v3713_v41 = vld [vmem:[#allocation9 + $0x60] sm:$0xff]  }
 0x1c0   :  { %2344 = vmatprep.subr.bf16.mxu0 %v3637_v50  ;;  %2377 = vmatprep.subr.bf16.mxu1 %v3640_v42  ;;  %v3704_v50 = vld [vmem:[#allocation8 + $0x708] ss:$16 sps:$4 sm:$0xff]   ;;  %v3714_v42 = vld [vmem:[#allocation9 + $0x20] sm:$0xff]  }
 0x1c3   :  { %2345 = vmatpush1.bf16.msra.mxu0 %v3635_v43  ;;  %2378 = vmatpush1.bf16.msra.mxu1 %v3638_v44  ;;  %v3715_v43 = vld [vmem:[#allocation9 + $0x58] sm:$0xff]  }
 0x1c4   :  { %2346 = vmatprep.subr.bf16.mxu0 %v3643_v45  ;;  %2379 = vmatprep.subr.bf16.mxu1 %v3646_v46  ;;  %v3716_v44 = vld [vmem:[#allocation9 + $0x18] sm:$0xff]   ;;  %v3717_v45 = vld [vmem:[#allocation9 + $0x50] sm:$0xff]  }
 0x1c7   :  { %2347 = vmatpush1.bf16.msra.mxu0 %v3641_v53  ;;  %2380 = vmatpush1.bf16.msra.mxu1 %v3644_v47  ;;  %v3718_v53 = vld [vmem:[#allocation9 + $0x10] sm:$0xff]  }
 0x1c8   :  { %2348 = vmatprep.subr.bf16.mxu0 %v3649_v48  ;;  %2381 = vmatprep.subr.bf16.mxu1 %v3652_v18  ;;  %v3719_v48 = vld [vmem:[#allocation9 + $0x48] sm:$0xff]  }
 0x1cb   :  { %2349 = vmatpush2.bf16.msra.mxu0 %v3647_v49  ;;  %2382 = vmatpush1.bf16.msra.mxu1 %v3650_v51  ;;  %v3720_v49 = vld [vmem:[#allocation9 + $0x8] sm:$0xff]   ;;  %v3721_v51 = vld [vmem:[#allocation9 + $0x40] sm:$0xff]  }
 0x1cc   :  { %2350 = vmatprep.subr.bf16.mxu0 %v3655_v52  ;;  %2383 = vmatprep.subr.bf16.mxu1 %v3658_v54  ;;  %v3723_v54 = vld [vmem:[#allocation9 + $0xf8] sm:$0xff]  }
 0x1cf   :  { %2351 = vmatpush2.bf16.msra.mxu0 %v3653_v55  ;;  %2384 = vmatpush1.bf16.msra.mxu1 %v3656_v56  ;;  %v3724_v55 = vld [vmem:[#allocation9 + $0xb8] sm:$0xff]   ;;  %v3725_v56 = vld [vmem:[#allocation9 + $0xf0] sm:$0xff]  }
 0x1d0   :  { %2352 = vmatprep.subr.bf16.mxu0 %v3661_v57  ;;  %2385 = vmatprep.subr.bf16.mxu1 %v3664_v58  ;;  %v3722_v57 = vld [vmem:[#allocation9] sm:$0xff]  }
 0x1d3   :  { %2353 = vmatpush2.bf16.msra.mxu0 %v3659_v59  ;;  %2386 = vmatpush1.bf16.msra.mxu1 %v3662_v60  ;;  %v3727_v59 = vld [vmem:[#allocation9 + $0xe8] sm:$0xff]  }
 0x1d4   :  { %2354 = vmatprep.subr.bf16.mxu0 %v3667_v21  ;;  %2387 = vmatprep.subr.bf16.mxu1 %v3670_v62  ;;  %v3728_v21 = vld [vmem:[#allocation9 + $0xa8] sm:$0xff]  }
 0x1d5   :  { %v4061_v62 = vld [vmem:[#allocation12 + $0x8] sm:$0xf] }
 0x1d7   :  { %2355 = vmatpush2.bf16.msra.mxu0 %v3665_v63  ;;  %2388 = vmatpush1.bf16.msra.mxu1 %v3668_v1  ;;  %v3729_v1 = vld [vmem:[#allocation9 + $0xe0] sm:$0xff]  }
 0x1d8   :  { %2356 = vmatprep.subr.bf16.mxu0 %v3673_v2  ;;  %2389 = vmatprep.subr.bf16.mxu1 %v3676_v4  ;;  %v3730_v4 = vld [vmem:[#allocation9 + $0xa0] sm:$0xff]  }
 0x1db   :  { %2357 = vmatpush2.bf16.msra.mxu0 %v3671_v5  ;;  %2390 = vmatpush2.bf16.msra.mxu1 %v3674_v10  ;;  %v3731_v5 = vld [vmem:[#allocation9 + $0xd8] sm:$0xff]   ;;  %v789_v10 = vrot.slane %v4061_v62, %v147_v7 }
 0x1dc   :  { %2358 = vmatprep.subr.bf16.mxu0 %v3679_v11  ;;  %2391 = vmatprep.subr.bf16.mxu1 %v3682_v12  ;;  %v3732_v11 = vld [vmem:[#allocation9 + $0x98] sm:$0xff]   ;;  %v793_v12 = vrot.slane %v4061_v62, %v151_v9 }
 0x1df   :  { %2359 = vmatpush2.bf16.msra.mxu0 %v3677_v13  ;;  %2392 = vmatpush2.bf16.msra.mxu1 %v3680_v14  ;;  %v3733_v13 = vld [vmem:[#allocation9 + $0xd0] sm:$0xff]  }
 0x1e0   :  { %2360 = vmatprep.subr.bf16.mxu0 %v3685_v15  ;;  %2393 = vmatprep.subr.bf16.mxu1 %v3688_v16  ;;  %v3734_v15 = vld [vmem:[#allocation9 + $0x90] sm:$0xff]  }
 0x1e3   :  { %2361 = vmatpush2.bf16.msra.mxu0 %v3683_v0  ;;  %2394 = vmatpush2.bf16.msra.mxu1 %v3686_v17 }
 0x1e4   :  { %2362 = vmatprep.subr.bf16.mxu0 %v3691_v8  ;;  %2395 = vmatprep.subr.bf16.mxu1 %v3694_v19 }
 0x1e7   :  { %2363 = vmatpush2.bf16.msra.mxu0 %v3689_v22  ;;  %2396 = vmatpush2.bf16.msra.mxu1 %v3692_v20  ;;  %v3735_v20 = vld [vmem:[#allocation9 + $0xc8] sm:$0xff]  }
 0x1e8   :  { %2397 = vmatprep.subr.bf16.mxu1 %v3697_v23  ;;  %3234 = vmatprep.subr.bf16.mxu0 %v3707_v25  ;;  %v3736_v25 = vld [vmem:[#allocation9 + $0x88] sm:$0xff]  }
 0x1ea   :  { %2365 = vmatmul.mubr.bf16.vlgmr.msra.gmra.mxu0 %v4040_v61  ;;  %v4056_v32 = vpop.f32.mrf.mxu0  ;;  %v3706_v61 = vld [vmem:[#allocation8 + $0x70c] ss:$16 sps:$4 sm:$0xff]  }
 0x1eb   :  { %2398 = vmatpush2.bf16.msra.mxu1 %v3695_v3  ;;  %3235 = vmatpush3.bf16.msra.mxu0 %v3708_v28  ;;  %v2121_v14 = vadd.f32 %v4056_v32, %v789_v10 }
 0x1ec   :  { %v4058_v34 = vpop.f32.mrf.mxu0  ;;  %2399 = vmatprep.subr.bf16.mxu1 %v3700_v29  ;;  %3236 = vmatprep.subr.bf16.mxu0 %v3709_v30  ;;  %v3737_v30 = vld [vmem:[#allocation9 + $0xc0] sm:$0xff]  }
 0x1ed   :  { %v2123_v16 = vadd.f32 %v4058_v34, %v793_v12  ;;  %v3745_v12 = vld [vmem:[#allocation11 + $0x8] sm:$0xff]  }
 0x1ee   :  { %v2124_v37 = vpop.f32.mrf.mxu0 }
 0x1ef   :  { %2400 = vmatpush2.bf16.msra.mxu1 %v3698_v24  ;;  %3237 = vmatpush3.bf16.msra.mxu0 %v3710_v33  ;;  %v3738_v24 = vld [vmem:[#allocation9 + $0x80] sm:$0xff]  }
 0x1f0   :  { %v2125_v40 = vpop.f32.mrf.mxu0  ;;  %2401 = vmatprep.subr.bf16.mxu1 %v3703_v36  ;;  %3238 = vmatprep.subr.bf16.mxu0 %v3711_v35 }
 0x1f3   :  { %2402 = vmatpush2.bf16.msra.mxu1 %v3701_v38  ;;  %3239 = vmatpush3.bf16.msra.mxu0 %v3712_v39 }
 0x1f4   :  { %2403 = vmatprep.subr.bf16.mxu1 %v3706_v61  ;;  %3240 = vmatprep.subr.bf16.mxu0 %v3713_v41 }
 0x1f7   :  { %2404 = vmatpush2.bf16.msra.mxu1 %v3704_v50  ;;  %3241 = vmatpush3.bf16.msra.mxu0 %v3714_v42  ;;  %v3739_v50 = vld [vmem:[#allocation11 + $0x38] sm:$0xff]   ;;  %v3910_v42 = vmov 0.0  }
 0x1f8   :  { %3242 = vmatprep.subr.bf16.mxu0 %v3715_v43  ;;  %3256 = vmatprep.subr.bf16.mxu1 %v3723_v54  ;;  %v3740_v43 = vld [vmem:[#allocation11 + $0x30] sm:$0xff]  }
 0x1fa   :  { %2406 = vmatmul.mubr.bf16.vlgmr.msra.gmra.mxu1 %v4047_v26  ;;  %v2161_v46 = vpop.f32.mrf.mxu1  ;;  %v3726_v26 = vld [vmem:[#allocation9 + $0xb0] sm:$0xff]  }
 0x1fb   :  { %3243 = vmatpush3.bf16.msra.mxu0 %v3716_v44  ;;  %3257 = vmatpush3.bf16.msra.mxu1 %v3724_v55  ;;  %v2162_v0 = vadd.f32 %v2161_v46, %v2121_v14  ;;  %v3741_v44 = vld [vmem:[#allocation11 + $0x28] sm:$0xff]   ;;  %v3743_v46 = vld [vmem:[#allocation11 + $0x18] sm:$0xff]   ;;  %v3746_v14 = vld [vmem:[#allocation11] sm:$0xff]  }
 0x1fc   :  { %v2163_v47 = vpop.f32.mrf.mxu1  ;;  %3244 = vmatprep.subr.bf16.mxu0 %v3717_v45  ;;  %3258 = vmatprep.subr.bf16.mxu1 %v3725_v56  ;;  %v3742_v45 = vld [vmem:[#allocation11 + $0x20] sm:$0xff]  }
 0x1fd   :  { %v2164_v17 = vadd.f32 %v2163_v47, %v2123_v16 }
 0x1fe   :  { %v2165_v18 = vpop.f32.mrf.mxu1 }
 0x1ff   :  { %3245 = vmatpush3.bf16.msra.mxu0 %v3718_v53  ;;  %3259 = vmatpush3.bf16.msra.mxu1 %v3726_v26 }
 0x200   :  { %v2166_v52 = vpop.f32.mrf.mxu1  ;;  %3246 = vmatprep.subr.bf16.mxu0 %v3719_v48  ;;  %3260 = vmatprep.subr.bf16.mxu1 %v3727_v59 }
 0x203   :  { %3247 = vmatpush3.bf16.msra.mxu0 %v3720_v49  ;;  %3261 = vmatpush3.bf16.msra.mxu1 %v3728_v21  ;;  %v797_v49 = vrot.slane %v4061_v62, %v155_v27 }
 0x204   :  { %3248 = vmatprep.subr.bf16.mxu0 %v3721_v51  ;;  %3262 = vmatprep.subr.bf16.mxu1 %v3729_v1  ;;  %v801_v51 = vrot.slane %v4061_v62, %v159_v31  ;;  %v3744_v31 = vld [vmem:[#allocation11 + $0x10] sm:$0xff]  }
 0x207   :  { %3249 = vmatpush3.bf16.msra.mxu0 %v3722_v57  ;;  %3263 = vmatpush3.bf16.msra.mxu1 %v3730_v4 }
 0x208   :  { %3264 = vmatprep.subr.bf16.mxu1 %v3731_v5  ;;  %3287 = vmatprep.subr.bf16.mxu0 %v3910_v42 }
 0x20b   :  { %3265 = vmatpush3.bf16.msra.mxu1 %v3732_v11 }
 0x20c   :  { %3266 = vmatprep.subr.bf16.mxu1 %v3733_v13 }
 0x20f   :  { %3267 = vmatpush3.bf16.msra.mxu1 %v3734_v15  ;;  %v3192_v15 = vld [vmem:[#allocation12 + $0xc] ss:$0 sm:$0xff] }
 0x210   :  { %3268 = vmatprep.subr.bf16.mxu1 %v3735_v20 }
 0x213   :  { %3269 = vmatpush3.bf16.msra.mxu1 %v3736_v25 }
 0x214   :  { %3270 = vmatprep.subr.bf16.mxu1 %v3737_v30 }
 0x217   :  { %3271 = vmatpush3.bf16.msra.mxu1 %v3738_v24 }
 0x22a   :  { %v2202_v58 = vpop.f32.mrf.mxu0 }
 0x22b   :  { %v2203_v8 = vadd.f32 %v2202_v58, %v2162_v0 }
 0x22c   :  { %v2204_v60 = vpop.f32.mrf.mxu0 }
 0x22d   :  { %v2205_v19 = vadd.f32 %v2204_v60, %v2164_v17 }
 0x22e   :  { %v2206_v63 = vpop.f32.mrf.mxu0 }
 0x230   :  { %v2207_v2 = vpop.f32.mrf.mxu0 }
 0x23a   :  { %v2243_v7 = vpop.f32.mrf.mxu1 }
 0x23b   :  { %v2244_v22 = vadd.f32 %v2243_v7, %v2203_v8  ;;  %v2766_v7 = vstv %s4089_s6 }
 0x23c   :  { %v2245_v23 = vpop.f32.mrf.mxu1 }
 0x23d   :  { %v2246_v9 = vadd.f32 %v2245_v23, %v2205_v19  ;;  %v2414_v3 = vmax.f32 %v2244_v22, 0.0 }
 0x23e   :  { %v2247_v28 = vpop.f32.mrf.mxu1 }
 0x23f   :  { %v2415_v29 = vmax.f32 %v2246_v9, 0.0  ;;  %v2418_v34 = vpack.c.bf16 %v2414_v3, %v2414_v3  ;;  %v3225_v3 = vld [vmem:[#allocation12 + $0xd] ss:$0 sm:$0xff] }
 0x240   :  { %v2248_v32 = vpop.f32.mrf.mxu1 }
 0x241   :  { %v2419_v33 = vpack.c.bf16 %v2415_v29, %v2415_v29 }
 0x243   :  { %2716 = vmatprep.mubr.bf16.mxu0 %v2419_v33 }
 0x244   :  { %2717 = vmatmul.mubr.bf16.vlgmr.msra.gmra.mxu0 %v2418_v34 }
 0x245   :  { %3288 = vmatpush3.bf16.msra.mxu0 %v3739_v50  ;;  %3303 = vmatprep.mubr.msk.bf16.mxu0 %vm3911_vm1, %v3910_v42 }
 0x246   :  { %3289 = vmatprep.subr.bf16.mxu0 %v3910_v42 }
 0x249   :  { %3290 = vmatpush3.bf16.msra.mxu0 %v3740_v43 }
 0x24a   :  { %3291 = vmatprep.subr.bf16.mxu0 %v3910_v42 }
 0x24d   :  { %3292 = vmatpush3.bf16.msra.mxu0 %v3741_v44 }
 0x24e   :  { %3293 = vmatprep.subr.bf16.mxu0 %v3910_v42 }
 0x251   :  { %3294 = vmatpush3.bf16.msra.mxu0 %v3742_v45 }
 0x252   :  { %3295 = vmatprep.subr.bf16.mxu0 %v3910_v42 }
 0x255   :  { %3296 = vmatpush3.bf16.msra.mxu0 %v3743_v46 }
 0x256   :  { %3297 = vmatprep.subr.bf16.mxu0 %v3910_v42 }
 0x259   :  { %3298 = vmatpush3.bf16.msra.mxu0 %v3744_v31 }
 0x25a   :  { %3299 = vmatprep.subr.bf16.mxu0 %v3910_v42 }
 0x25d   :  { %3300 = vmatpush3.bf16.msra.mxu0 %v3745_v12 }
 0x25e   :  { %3301 = vmatprep.subr.bf16.mxu0 %v3910_v42 }
 0x261   :  { %3302 = vmatpush3.bf16.msra.mxu0 %v3746_v14 }
 0x26a   :  { %v2284_v36 = vpop.f32.mrf.mxu0 }
 0x26b   :  { %v2285_v52 = vadd.f32 %v2284_v36, %v797_v49 }
 0x26c   :  { %v2286_v35 = vpop.f32.mrf.mxu0 }
 0x26d   :  { %v2287_v54 = vadd.f32 %v2286_v35, %v801_v51 }
 0x26e   :  { %v2288_v37 = vpop.f32.mrf.mxu0 }
 0x270   :  { %v2289_v38 = vpop.f32.mrf.mxu0 }
 0x27a   :  { %v2325_v39 = vpop.f32.mrf.mxu1 }
 0x27b   :  { %v2326_v55 = vadd.f32 %v2325_v39, %v2285_v52 }
 0x27c   :  { %v2327_v40 = vpop.f32.mrf.mxu1 }
 0x27d   :  { %v2328_v56 = vadd.f32 %v2327_v40, %v2287_v54 }
 0x27e   :  { %v2329_v61 = vpop.f32.mrf.mxu1 }
 0x280   :  { %v2330_v41 = vpop.f32.mrf.mxu1 }
 0x2aa   :  { %v2366_v53 = vpop.f32.mrf.mxu0 }
 0x2ab   :  { %v2367_v57 = vadd.f32 %v2366_v53, %v2326_v55 }
 0x2ac   :  { %v2368_v47 = vpop.f32.mrf.mxu0 }
 0x2ad   :  { %v2369_v58 = vadd.f32 %v2368_v47, %v2328_v56 }
 0x2ae   :  { %v2370_v48 = vpop.f32.mrf.mxu0 }
 0x2b0   :  { %v2371_v18 = vpop.f32.mrf.mxu0 }
 0x2ba   :  { %v2407_v26 = vpop.f32.mrf.mxu1 }
 0x2bb   :  { %v2408_v59 = vadd.f32 %v2407_v26, %v2367_v57 }
 0x2bc   :  { %v2409_v60 = vpop.f32.mrf.mxu1 }
 0x2bd   :  { %v2410_v21 = vadd.f32 %v2409_v60, %v2369_v58  ;;  %v2416_v63 = vmax.f32 %v2408_v59, 0.0 }
 0x2be   :  { %v2411_v1 = vpop.f32.mrf.mxu1 }
 0x2bf   :  { %v2417_v2 = vmax.f32 %v2410_v21, 0.0  ;;  %v2420_v27 = vpack.c.bf16 %v2416_v63, %v2416_v63 }
 0x2c0   :  { %v2412_v4 = vpop.f32.mrf.mxu1 }
 0x2c1   :  { %v2421_v5 = vpack.c.bf16 %v2417_v2, %v2417_v2 }
 0x2c3   :  { %2756 = vmatprep.mubr.bf16.mxu1 %v2421_v5 }
 0x2c4   :  { %2757 = vmatmul.mubr.bf16.vlgmr.msra.gmra.mxu1 %v2420_v27 }
 0x304   :  { %v3250_v6 = vpop.f32.mrf.mxu0 }
 0x306   :  { %v3251_v62 = vpop.f32.mrf.mxu0 }
 0x307   :  { %v3252_v10 = vadd.f32 %v3251_v62, %v3250_v6 }
 0x308   :  { %v3253_v11 = vpop.f32.mrf.mxu0 }
 0x309   :  { %v2719_v17 = vadd.f32 %v3252_v10, %v3192_v15 }
 0x30a   :  { %v3254_v13 = vpop.f32.mrf.mxu0 }
 0x384   :  { %v3272_v16 = vpop.f32.mrf.mxu1 }
 0x386   :  { %v3273_v0 = vpop.f32.mrf.mxu1 }
 0x387   :  { %v3274_v8 = vadd.f32 %v3273_v0, %v3272_v16 }
 0x388   :  { %v3275_v19 = vpop.f32.mrf.mxu1 }
 0x389   :  { %v2759_v22 = vadd.f32 %v3274_v8, %v2719_v17 }
 0x38a   :  { %v3276_v20 = vpop.f32.mrf.mxu1 }
 0x38b   :  { %vm2765_vm2 = vcmp.ge.f32.partialorder %v2759_v22, 0.0  ;;  %v2767_v23 = vmul.f32 %v2766_v7, %v2759_v22 }
 0x38d   :  { %v2768_v25 = vsel %vm2765_vm2, %v2759_v22, %v2767_v23 }
 0x38e   :  { %2880 = vst [vmem:[#allocation14] sm:$0xff] %v2768_v25  ;;  %v2769_v9 = vpack.c.bf16 %v2768_v25, %v2768_v25 }
 0x390   :  { %3304 = vmatmul.mubr.bf16.vlgmr.msra.gmra.mxu0 %v2769_v9 }
 0x450   :  { %v2874_v28 = vpop.f32.mrf.mxu0 }
 0x451   :  { %v2875_v29 = vadd.f32 %v3225_v3, %v2874_v28 }
 0x452   :  { %v3305_v30 = vpop.f32.mrf.mxu0 }
 0x453   :  { %2881 = vst [vmem:[#allocation14 + $0x8] sm:$0xff] %v2875_v29 }
 0x454   :  { %v2877_v32 = vpop.f32.mrf.mxu0 }
 0x455   :  { %3878 = shalt.err (!%p3875_p6)
}
 0x456   :  { %2891 = dma.vmem_to_hbm [thread:$0]  %s2889_s11, 256, %s4090_s7, [#allocation5]   ;;  %v3306_v24 = vpop.f32.mrf.mxu0 }
 0x457   :  { %3895 = dma.done.wait [#allocation5], 256  }
 0x458   :  { %3896 = vsyncadd [#allocation5], 4294967040 }
 0x459   :  { %2895 = vsyncpa [#allocation4], 1 }
 0x45a   :  { %2896 = vsyncpa [#allocation7], 1 }
 0x45b   :  { %2897 = vsyncpa [#allocation10], 1 }
 0x45c   :  { %2898 = vsyncpa [#allocation13], 1 }
 0x45d   :  { %2899 = vsyncpa [#allocation5], 1 }

</bundles_post_ra>
